<compile_context>
chip_gen: v6e
topology: v6e:2x2x1
jax: 0.10.0
libtpu: 0.0.40
codegen_flags: <defaults>
</compile_context>

<pallas_src>
import jax
import jax.numpy as jnp
from jax.experimental import pallas as pl
from jax.experimental.pallas import tpu as pltpu

CLAMP_MAX = float(jnp.log(1.0 / 0.01))  # == module's self.clamp_max


def _cosine_gate_kernel(x_ref, w_ref, b_ref, sim_ref, out_ref):
    # x_ref:   (TN, D)      token tile (native dtype, streamed from HBM)
    # w_ref:   (D,  Ppad)   projector weight, pre-transposed + lane-padded (resident)
    # b_ref:   (1,  Ppad)   projector bias, lane-padded, f32 (resident)
    # sim_ref: (Ppad, E)    column-normalized sim_matrix * exp(clamped temp), f32 (resident)
    # out_ref: (TN, E)      gate logits
    proj = jnp.dot(x_ref[...], w_ref[...],
                   preferred_element_type=jnp.float32) + b_ref[...]       # (TN, Ppad) f32

    # Per-row squared L2 norm (padded columns are exactly zero -> no effect).
    sumsq = jnp.sum(proj * proj, axis=1, keepdims=True)                    # (TN, 1)

    logits = jnp.dot(proj, sim_ref[...],
                     preferred_element_type=jnp.float32)                   # (TN, E)

    # rsqrt(max(sumsq, 1e-24)) == 1 / max(||proj||, 1e-12); exact (EUP rsqrt).
    inv_norm = jax.lax.rsqrt(jnp.maximum(sumsq, 1e-24))
    out_ref[...] = (logits * inv_norm).astype(out_ref.dtype)


def _round_up(n, m):
    return ((n + m - 1) // m) * m


def _sublane_multiple(dtype):
    # 8 for 32-bit, 16 for 16-bit, 32 for 8-bit element types.
    bits = jnp.dtype(dtype).itemsize * 8
    return max(8, 256 // bits)


def cosine_topk_gate(x, w_proj_t, b_proj, sim_matrix, temperature, *,
                     token_tile=4096, compute_dtype=None):
    """CosineTopKGate forward.

    x:           (N, model_dim)  tokens (f32 or bf16)
    w_proj_t:    (model_dim, proj_dim)  == cosine_projector.weight.T
    b_proj:      (proj_dim,)
    sim_matrix:  (proj_dim, num_experts)
    temperature: (1,)
    compute_dtype: optional dtype (e.g. jnp.bfloat16) to stream x / W^T in;
                   MXU still accumulates in f32.
    returns logits (N, num_experts), f32.
    """
    N, D = x.shape
    P, E = sim_matrix.shape
    assert w_proj_t.shape == (D, P)

    if compute_dtype is not None:
        x = x.astype(compute_dtype)
        w_proj_t = w_proj_t.astype(compute_dtype)
    else:
        w_proj_t = w_proj_t.astype(x.dtype)

    # --- grid-invariant work hoisted out of the kernel (tiny (P,E) XLA ops) ---
    #   F.normalize(sim_matrix, dim=0) * exp(clamp(temperature, max=clamp_max))
    sim32 = sim_matrix.astype(jnp.float32)
    col_norm = jnp.sqrt(jnp.sum(sim32 * sim32, axis=0, keepdims=True))
    scale = jnp.exp(jnp.minimum(temperature.astype(jnp.float32).reshape(-1)[0],
                                CLAMP_MAX))
    sim_scaled = (sim32 / jnp.maximum(col_norm, 1e-12)) * scale            # (P, E) f32

    b2 = b_proj.astype(jnp.float32).reshape(1, P)

    # Lane-pad proj_dim to a multiple of 128 (bit-identical: padding is zero).
    p_pad = max(128, _round_up(P, 128))
    if p_pad != P:
        w_proj_t = jnp.pad(w_proj_t, ((0, 0), (0, p_pad - P)))
        b2 = jnp.pad(b2, ((0, 0), (0, p_pad - P)))
        sim_scaled = jnp.pad(sim_scaled, ((0, p_pad - P), (0, 0)))

    # Tile: dtype-correct sublane multiple, big enough to amortize per-step
    # overhead, but capped so the grid has at least 2 programs (v7x megacore).
    sub = _sublane_multiple(x.dtype)
    half = _round_up(pl.cdiv(N, 2), sub)
    tile = max(sub, min(_round_up(token_tile, sub), half))
    grid = (pl.cdiv(N, tile),)   # ragged last block is masked by Pallas

    out = pl.pallas_call(
        _cosine_gate_kernel,
        out_shape=jax.ShapeDtypeStruct((N, E), jnp.float32),
        grid_spec=pltpu.PrefetchScalarGridSpec(
            num_scalar_prefetch=0,
            grid=grid,
            in_specs=[
                pl.BlockSpec((tile, D), lambda i: (i, 0)),     # x tile (streamed)
                pl.BlockSpec((D, p_pad), lambda i: (0, 0)),    # W^T   (resident)
                pl.BlockSpec((1, p_pad), lambda i: (0, 0)),    # bias  (resident)
                pl.BlockSpec((p_pad, E), lambda i: (0, 0)),    # sim_scaled (resident)
            ],
            out_specs=pl.BlockSpec((tile, E), lambda i: (i, 0)),
        ),
        compiler_params=pltpu.CompilerParams(
            dimension_semantics=("parallel",),                 # megacore-shardable
        ),
    )(x, w_proj_t, b2, sim_scaled)
    return out


def reference(x, w_proj_t, b_proj, sim_matrix, temperature):
    proj = x.astype(jnp.float32) @ w_proj_t.astype(jnp.float32) + b_proj[None, :]
    proj_n = proj / jnp.maximum(
        jnp.linalg.norm(proj, axis=1, keepdims=True), 1e-12)
    sim_n = sim_matrix / jnp.maximum(
        jnp.linalg.norm(sim_matrix, axis=0, keepdims=True), 1e-12)
    scale = jnp.exp(jnp.minimum(temperature[0], CLAMP_MAX))
    return (proj_n @ sim_n) * scale


if __name__ == "__main__":
    # Module hyper-params (small, TPU-friendly):
    model_dim = 128
    num_global_experts = 8
    proj_dim = min(model_dim // 2, 256)  # 64
    init_t = 0.5

    # Token batch (flattened B*H*W tokens of a ConvNeXt-MoE stage).
    n_tokens = 1024

    key = jax.random.PRNGKey(0)
    kx, kw, kb, ks = jax.random.split(key, 4)

    x = jax.random.normal(kx, (n_tokens, model_dim), dtype=jnp.float32)

    # Parameter init mirroring the module's __init__ shapes:
    #   Linear(model_dim, proj_dim): weight (proj_dim, model_dim), bias (proj_dim,)
    #   sim_matrix ~ Normal(0, 0.01), shape (proj_dim, num_global_experts)
    #   temperature = log(1 / init_t)
    bound = 1.0 / jnp.sqrt(model_dim)
    w_proj = jax.random.uniform(kw, (proj_dim, model_dim), jnp.float32, -bound, bound)
    b_proj = jax.random.uniform(kb, (proj_dim,), jnp.float32, -bound, bound)
    sim_matrix = 0.01 * jax.random.normal(ks, (proj_dim, num_global_experts), jnp.float32)
    temperature = jnp.log(jnp.full((1,), 1.0 / init_t, dtype=jnp.float32))

    w_proj_t = w_proj.T  # (model_dim, proj_dim) for row-major matmul in the kernel

    # --- f32 path (2-program grid, even split) ---
    logits = cosine_topk_gate(x, w_proj_t, b_proj, sim_matrix, temperature)
    jax.block_until_ready(logits)
    ref = reference(x, w_proj_t, b_proj, sim_matrix, temperature)
    assert logits.shape == (n_tokens, num_global_experts)
    assert jnp.allclose(logits, ref, atol=1e-5, rtol=1e-5), "mismatch vs reference (f32)"

    # --- ragged-N path (no jnp.pad: last block masked by Pallas) ---
    n_ragged = 1000
    logits_r = cosine_topk_gate(x[:n_ragged], w_proj_t, b_proj, sim_matrix, temperature)
    jax.block_until_ready(logits_r)
    assert logits_r.shape == (n_ragged, num_global_experts)
    assert jnp.allclose(logits_r, ref[:n_ragged], atol=1e-5, rtol=1e-5), \
        "mismatch vs reference (ragged N)"

    # --- bf16 streaming path (halves HBM traffic; f32 MXU accumulation) ---
    logits_bf16 = cosine_topk_gate(x, w_proj_t, b_proj, sim_matrix, temperature,
                                   compute_dtype=jnp.bfloat16)
    jax.block_until_ready(logits_bf16)
    assert logits_bf16.shape == (n_tokens, num_global_experts)
    assert jnp.all(jnp.isfinite(logits_bf16))
    assert jnp.allclose(logits_bf16, ref, atol=5e-2, rtol=5e-2), \
        "mismatch vs reference (bf16 stream)"

    print("KERNEL_OK")
</pallas_src>

<mosaic_0001>
module attributes {stable_mosaic.version = 11 : i64} {
  func.func @_cosine_gate_kernel(%arg0: i32, %arg1: memref<512x128xf32, #tpu.memory_space<vmem>>, %arg2: memref<128x128xf32, #tpu.memory_space<vmem>>, %arg3: memref<1x128xf32, #tpu.memory_space<vmem>>, %arg4: memref<128x8xf32, #tpu.memory_space<vmem>>, %arg5: memref<512x8xf32, #tpu.memory_space<vmem>>) attributes {dimension_semantics = [#tpu.dimension_semantics<parallel>], iteration_bounds = array<i64: 2>, scalar_prefetch = 0 : i64, scratch_operands = 0 : i64, tpu.core_type = #tpu.core_type<tc>, window_params = [{transform_indices = @transform_0, window_bounds = array<i64: 512, 128>}, {pipeline_mode = #tpu.pipeline_mode<synchronous>, transform_indices = @transform_1, window_bounds = array<i64: 128, 128>}, {pipeline_mode = #tpu.pipeline_mode<synchronous>, transform_indices = @transform_2, window_bounds = array<i64: 1, 128>}, {pipeline_mode = #tpu.pipeline_mode<synchronous>, transform_indices = @transform_3, window_bounds = array<i64: 128, 8>}, {transform_indices = @transform_4, window_bounds = array<i64: 512, 8>}]} {
    %c0 = arith.constant 0 : index
    %c0_0 = arith.constant 0 : index
    %0 = vector.load %arg1[%c0, %c0_0] : memref<512x128xf32, #tpu.memory_space<vmem>>, vector<512x128xf32>
    %c0_1 = arith.constant 0 : index
    %c0_2 = arith.constant 0 : index
    %1 = vector.load %arg2[%c0_1, %c0_2] : memref<128x128xf32, #tpu.memory_space<vmem>>, vector<128x128xf32>
    %cst = arith.constant dense<0.000000e+00> : vector<512x128xf32>
    %2 = tpu.matmul %0, %1, %cst {dimension_numbers = #tpu.dot_dimension_numbers<[1], [0], [0], [1], [0, 0, 1, 1], [], []>} : vector<512x128xf32>, vector<128x128xf32>, vector<512x128xf32> -> vector<512x128xf32>
    %c0_3 = arith.constant 0 : index
    %c0_4 = arith.constant 0 : index
    %3 = vector.load %arg3[%c0_3, %c0_4] : memref<1x128xf32, #tpu.memory_space<vmem>>, vector<1x128xf32>
    %4 = vector.broadcast %3 : vector<1x128xf32> to vector<512x128xf32>
    %5 = arith.addf %2, %4 : vector<512x128xf32>
    %6 = arith.mulf %5, %5 : vector<512x128xf32>
    %cst_5 = arith.constant dense<0.000000e+00> : vector<512xf32>
    %7 = vector.multi_reduction <add>, %6, %cst_5 [1] : vector<512x128xf32> to vector<512xf32>
    %8 = vector.shape_cast %7 : vector<512xf32> to vector<512x1xf32>
    %c0_6 = arith.constant 0 : index
    %c0_7 = arith.constant 0 : index
    %9 = vector.load %arg4[%c0_6, %c0_7] : memref<128x8xf32, #tpu.memory_space<vmem>>, vector<128x8xf32>
    %cst_8 = arith.constant dense<0.000000e+00> : vector<512x8xf32>
    %10 = tpu.matmul %5, %9, %cst_8 {dimension_numbers = #tpu.dot_dimension_numbers<[1], [0], [0], [1], [0, 0, 1, 1], [], []>} : vector<512x128xf32>, vector<128x8xf32>, vector<512x8xf32> -> vector<512x8xf32>
    %cst_9 = arith.constant 1.000000e-24 : f32
    %11 = vector.broadcast %cst_9 : f32 to vector<512x1xf32>
    %12 = arith.maximumf %8, %11 : vector<512x1xf32>
    %13 = math.rsqrt %12 : vector<512x1xf32>
    %14 = vector.broadcast %13 : vector<512x1xf32> to vector<512x8xf32>
    %15 = arith.mulf %10, %14 : vector<512x8xf32>
    %c0_10 = arith.constant 0 : index
    %c0_11 = arith.constant 0 : index
    %16 = vector.load %arg5[%c0_10, %c0_11] : memref<512x8xf32, #tpu.memory_space<vmem>>, vector<512x8xf32>
    tpu.vector_store %arg5[%c0_10, %c0_11], %15 {strides = array<i32>} : memref<512x8xf32, #tpu.memory_space<vmem>>, vector<512x8xf32>,
    return
  }
  func.func @transform_0(%arg0: i32) -> (i32, i32) {
    %c0_i32 = arith.constant 0 : i32
    %c0_i32_0 = arith.constant 0 : i32
    return %arg0, %c0_i32 : i32, i32
  }
  func.func @transform_1(%arg0: i32) -> (i32, i32) {
    %c0_i32 = arith.constant 0 : i32
    %c0_i32_0 = arith.constant 0 : i32
    %c0_i32_1 = arith.constant 0 : i32
    return %c0_i32, %c0_i32_0 : i32, i32
  }
  func.func @transform_2(%arg0: i32) -> (i32, i32) {
    %c0_i32 = arith.constant 0 : i32
    %c0_i32_0 = arith.constant 0 : i32
    %c0_i32_1 = arith.constant 0 : i32
    return %c0_i32, %c0_i32_0 : i32, i32
  }
  func.func @transform_3(%arg0: i32) -> (i32, i32) {
    %c0_i32 = arith.constant 0 : i32
    %c0_i32_0 = arith.constant 0 : i32
    %c0_i32_1 = arith.constant 0 : i32
    return %c0_i32, %c0_i32_0 : i32, i32
  }
  func.func @transform_4(%arg0: i32) -> (i32, i32) {
    %c0_i32 = arith.constant 0 : i32
    %c0_i32_0 = arith.constant 0 : i32
    return %arg0, %c0_i32 : i32, i32
  }
}

</mosaic_0001>

<bundles_post_ra>
// kernel: tpu_custom_call.1
= control target key start
LH: loop header
LB: loop body
LE: loop exit
PB: predicated region body
PF: predicated region fallthrough
CT: control target
= control target key end

     0   :  { %9 = vsyncpa [#allocation3], 0  ;;  %s2879_s0 = inlined_call_operand.hbm [shape: f32[1024,128], index: 0, kind: input, shape index: {}]   ;;  %s2880_s1 = inlined_call_operand.vmem [shape: f32[128,128], index: 1, kind: input, shape index: {}]   ;;  %s2881_s2 = inlined_call_operand.vmem [shape: f32[1,128], index: 2, kind: input, shape index: {}]   ;;  %s2882_s3 = inlined_call_operand.vmem [shape: f32[128,8], index: 3, kind: input, shape index: {}]   ;;  %s2883_s4 = inlined_call_operand.vmem [shape: f32[1024,8], index: 4, kind: output, shape index: {}]  }
   0x1   :  { %11 = vsyncpa [#allocation3 + $0x1], 0  ;;  %s2301_s15 = smov 0   ;;  %s2303_s16 = smov 0  }
   0x2   :  { %s2305_s17 = smov 0   ;;  %s2307_s18 = smov 0  }
   0x3 LB: > { %s1609_s19 = sadd.s32 4294967295, %s2271_s18   ;;  %s2321_s20 = sadd.s32 1, %s2271_s18   ;;  %s2271_s18 = sphi %s2307_s18, %s2892_s18   ;;  %s2267_s17 = sphi %s2305_s17, %s2891_s17   ;;  %s2263_s16 = sphi %s2303_s16, %s2890_s16   ;;  %s2259_s15 = sphi %s2301_s15, %s2889_s15  }
   0x4   : > { %s21_s21 = ssub.s32 %s2271_s18, %s2321_s20  ;;  %s24_s22 = sadd.s32 1, %s2267_s17 }
   0x5   : > { %p22_p0 = scmp.eq.s32.totalorder %s21_s21, 0  ;;  %p31_p1 = scmp.ne.s32.totalorder %s2267_s17, %s2263_s16 }
   0x6   : > { %p32_p2 = scmp.eq.s32.totalorder %s2271_s18, 0  ;;  %p37_p3 = scmp.ne.s32.totalorder %s2263_s16, %s2259_s15 }
   0x7   : > { %s2331_s23 = scalar_select %p22_p0, %s2267_s17, %s24_s22  }
   0x8   : > { %p33_p4 = por %p32_p2, %p31_p1  ;;  %p38_p5 = scmp.eq.s32.totalorder %s1609_s19, 0 }
   0x9   : > { %p2046_p6 = scmp.lt.s32.totalorder %s2271_s18, 2  ;;  %s159_s25 = sand.u32 1, %s2267_s17  }
   0xa   : > { %p2336_p7 = por %p38_p5, %p37_p3  ;;  %s1613_s26 = sshll.u32 %s159_s25, 9 }
   0xb   : > { %s1623_s27 = sshll.u32 %s2271_s18, 13  ;;  %s163_s5 = scalar_lea.vmem [#allocation2], %s1613_s26 }
   0xc   : > { %s2885_s24 = scalar_select %p2336_p7, 1, 0 }
   0xd   : > { %s2345_s30 = scalar_lea.hbm %s2879_s0, %s1623_s27  ;;  %s170_s6 = sshll.u32 %s163_s5, 4  ;;  %s2347_s6 = int_to_ptr.vmem [resolvable:$true] %s170_s6 }
   0xe   : > { %p2349_p8 = pnand %p2046_p6, %p33_p4  ;;  %s2354_s8 = scalar_lea.sflag [#allocation3], %s159_s25 }
   0xf   : > { %s2209_s9 = scalar_lea.hbm %s2345_s30, 8192  ;;  %s2214_s12 = scalar_lea.hbm %s2879_s0, 16384 }
  0x10   : > { %p2210_p10 = scmp.ne.s32.totalorder %s2345_s30, %s2209_s9  ;;  %p2211_p11 = pneg %p2349_p8 }
  0x11   : > { %p2215_p0 = scmp.lt.s32.totalorder %s2345_s30, %s2879_s0  ;;  %p2216_p1 = scmp.lt.s32.totalorder %s2214_s12, %s2209_s9 }
  0x12   : > { %p2212_p12 = pnand %p2211_p11, %p2210_p10 }
  0x13   : > { %p2217_p2 = por %p2216_p1, %p2215_p0 }
  0x14   : > { %p2213_p13 = pneg %p2212_p12 }
  0x16   : > { %p2218_p3 = pnand %p2217_p2, %p2213_p13 }
  0x18   : > { %2221 = shalt.err (!%p2218_p3)
}
  0x19   : > { %s2222_s15 = scalar_lea.vmem %s2347_s6, 8192  ;;  %s2273_s21 = smov [#allocation2]  }
  0x1a   : > { %p2223_p4 = scmp.ne.s32.totalorder %s2347_s6, %s2222_s15  ;;  %s2227_s22 = sshll.u32 %s2273_s21, 4  ;;  %s2228_s22 = int_to_ptr.vmem [resolvable:$false] %s2227_s22 }
  0x1b   : > { %s2229_s25 = scalar_lea.vmem %s2228_s22, 16384  ;;  %p2230_p10 = scmp.lt.s32.totalorder %s2347_s6, %s2228_s22 }
  0x1c   : > { %p2225_p5 = pnand %p2223_p4, %p2211_p11  ;;  %p2231_p12 = scmp.lt.s32.totalorder %s2229_s25, %s2222_s15 }
  0x1e   : > { %p2226_p6 = pneg %p2225_p5  ;;  %p2232_p9 = por %p2231_p12, %p2230_p10 }
  0x20   : > { %p2233_p7 = pnand %p2232_p9, %p2226_p6 }
  0x22   : > { %2236 = shalt.err (!%p2233_p7)
}
  0x23   : > { %s2274_s26 = smov 128   ;;  %s2275_s27 = smov 8  }
  0x24   : > { %2045 = dma.hbm_to_vmem [thread:$0]  (!%p2349_p8), %s2345_s30, 8192, %s2347_s6, %s2354_s8, %s2274_s26, %s2274_s26, %s2275_s27  }
  0x25   : > { %p178_p11 = scmp.lt.s32.totalorder %s2271_s18, 3  ;;  %p2887_p13 = scmp.ge.s32.totalorder %s2271_s18, 1 }
  0x27   : > { %p179_p0 = pnand %p2887_p13, %p178_p11 }
  0x28   : > { %s184_s28 = sand.u32 (!%p179_p0), 1, %s2263_s16   ;;  %p2888_p7 = scmp.ne.s32.totalorder (!%p179_p0), %s2885_s24, 0 }
  0x29   : > { %182 = sbr.rel (%p179_p0) target bundleno = 600 (0x258), region = 36  ;;  %s1617_s29 = sshll.u32 (!%p179_p0), %s184_s28, 9 }
  0x2a   : > { %s185_s5 = scalar_lea.sflag (!%p179_p0), [#allocation3], %s184_s28  ;;  %s2379_s9 = scalar_lea.vmem (!%p179_p0), [#allocation2], %s1617_s29 }
  0x2e   : > { %2254 = dma.done.wait (%p2888_p7), %s185_s5, 8192  }
  0x2f   : > { %2256 = vsyncadd (%p2888_p7), %s185_s5, 4294959104  ;;  %v299_v0 = vld [vmem:[%s2880_s1 + $0x78] sm:$0xff]  ;;  %v298_v1 = vld [vmem:[%s2880_s1 + $0x70] sm:$0xff]  ;;  %vm1477_vm0 = vcmask 64512  }
  0x30   : > { %1784 = vmatprep.subr.mxu0 %v299_v0  ;;  %v297_v2 = vld [vmem:[%s2880_s1 + $0x68] sm:$0xff]  ;;  %v296_v3 = vld [vmem:[%s2880_s1 + $0x60] sm:$0xff]  ;;  %v295_v5 = vld [vmem:[%s2880_s1 + $0x58] sm:$0xff] }
  0x31   : > { %1785 = vmatpush3.msra.mxu0 %v299_v0  ;;  %v220_v4 = vld [vmem:[%s2379_s9] sm:$0xff]  ;;  %v294_v6 = vld [vmem:[%s2880_s1 + $0x50] sm:$0xff]  ;;  %v293_v7 = vld [vmem:[%s2880_s1 + $0x48] sm:$0xff] }
  0x32   : > { %1786 = vmatprep.subr.mxu0 %v298_v1  ;;  %1816 = vmatprep.mubr.f32.mxu0 %v220_v4  ;;  %v292_v8 = vld [vmem:[%s2880_s1 + $0x40] sm:$0xff]  ;;  %v291_v9 = vld [vmem:[%s2880_s1 + $0x38] sm:$0xff]  ;;  %v290_v10 = vld [vmem:[%s2880_s1 + $0x30] sm:$0xff] }
  0x33   : > { %1787 = vmatpush3.msra.mxu0 %v298_v1  ;;  %v289_v11 = vld [vmem:[%s2880_s1 + $0x28] sm:$0xff]  ;;  %v288_v12 = vld [vmem:[%s2880_s1 + $0x20] sm:$0xff]  ;;  %v287_v13 = vld [vmem:[%s2880_s1 + $0x18] sm:$0xff] }
  0x34   : > { %1788 = vmatprep.subr.mxu0 %v297_v2  ;;  %v286_v14 = vld [vmem:[%s2880_s1 + $0x10] sm:$0xff]  ;;  %v285_v15 = vld [vmem:[%s2880_s1 + $0x8] sm:$0xff]  ;;  %v284_v16 = vld [vmem:[%s2880_s1] sm:$0xff] }
  0x35   : > { %1789 = vmatpush3.msra.mxu0 %v297_v2  ;;  %v899_v17 = vld [vmem:[%s2882_s3 + $0x78] sm:$0xff]  ;;  %v898_v18 = vld [vmem:[%s2882_s3 + $0x70] sm:$0xff]  ;;  %v221_v19 = vld [vmem:[%s2379_s9 + $0x8] sm:$0xff] }
  0x36   : > { %1790 = vmatprep.subr.mxu0 %v296_v3  ;;  %1912 = vmatprep.subr.mxu1 %v899_v17  ;;  %v222_v20 = vld [vmem:[%s2379_s9 + $0x10] sm:$0xff]  ;;  %v897_v21 = vld [vmem:[%s2882_s3 + $0x68] sm:$0xff]  ;;  %v896_v22 = vld [vmem:[%s2882_s3 + $0x60] sm:$0xff] }
  0x37   : > { %1791 = vmatpush3.msra.mxu0 %v296_v3  ;;  %1913 = vmatpush3.msra.mxu1 %v899_v17  ;;  %v223_v23 = vld [vmem:[%s2379_s9 + $0x18] sm:$0xff]  ;;  %v224_v24 = vld [vmem:[%s2379_s9 + $0x20] sm:$0xff]  ;;  %v894_v26 = vld [vmem:[%s2882_s3 + $0x50] sm:$0xff] }
  0x38   : > { %1792 = vmatprep.subr.mxu0 %v295_v5  ;;  %1914 = vmatprep.subr.mxu1 %v898_v18  ;;  %v895_v25 = vld [vmem:[%s2882_s3 + $0x58] sm:$0xff]  ;;  %v225_v27 = vld [vmem:[%s2379_s9 + $0x28] sm:$0xff]  ;;  %v226_v28 = vld [vmem:[%s2379_s9 + $0x30] sm:$0xff] }
  0x39   : > { %1793 = vmatpush3.msra.mxu0 %v295_v5  ;;  %1915 = vmatpush3.msra.mxu1 %v898_v18  ;;  %v893_v29 = vld [vmem:[%s2882_s3 + $0x48] sm:$0xff]  ;;  %v892_v30 = vld [vmem:[%s2882_s3 + $0x40] sm:$0xff]  ;;  %v227_v31 = vld [vmem:[%s2379_s9 + $0x38] sm:$0xff] }
  0x3a   : > { %1794 = vmatprep.subr.mxu0 %v294_v6  ;;  %1916 = vmatprep.subr.mxu1 %v897_v21  ;;  %v228_v32 = vld [vmem:[%s2379_s9 + $0x40] sm:$0xff]  ;;  %v891_v33 = vld [vmem:[%s2882_s3 + $0x38] sm:$0xff]  ;;  %v890_v34 = vld [vmem:[%s2882_s3 + $0x30] sm:$0xff] }
  0x3b   : > { %1795 = vmatpush3.msra.mxu0 %v294_v6  ;;  %1917 = vmatpush3.msra.mxu1 %v897_v21  ;;  %v229_v35 = vld [vmem:[%s2379_s9 + $0x48] sm:$0xff]  ;;  %v230_v36 = vld [vmem:[%s2379_s9 + $0x50] sm:$0xff]  ;;  %v888_v38 = vld [vmem:[%s2882_s3 + $0x20] sm:$0xff] }
  0x3c   : > { %1796 = vmatprep.subr.mxu0 %v293_v7  ;;  %1918 = vmatprep.subr.mxu1 %v896_v22  ;;  %v889_v37 = vld [vmem:[%s2882_s3 + $0x28] sm:$0xff]  ;;  %v231_v39 = vld [vmem:[%s2379_s9 + $0x58] sm:$0xff]  ;;  %v232_v40 = vld [vmem:[%s2379_s9 + $0x60] sm:$0xff] }
  0x3d   : > { %1797 = vmatpush3.msra.mxu0 %v293_v7  ;;  %1919 = vmatpush3.msra.mxu1 %v896_v22  ;;  %v887_v41 = vld [vmem:[%s2882_s3 + $0x18] sm:$0xff]  ;;  %v233_v42 = vld [vmem:[%s2379_s9 + $0x68] sm:$0xff]  ;;  %v234_v43 = vld [vmem:[%s2379_s9 + $0x70] sm:$0xff] }
  0x3e   : > { %1798 = vmatprep.subr.mxu0 %v292_v8  ;;  %1920 = vmatprep.subr.mxu1 %v895_v25  ;;  %v235_v44 = vld [vmem:[%s2379_s9 + $0x78] sm:$0xff]  ;;  %v236_v45 = vld [vmem:[%s2379_s9 + $0x80] sm:$0xff]  ;;  %v237_v46 = vld [vmem:[%s2379_s9 + $0x88] sm:$0xff] }
  0x3f   : > { %1799 = vmatpush3.msra.mxu0 %v292_v8  ;;  %1921 = vmatpush3.msra.mxu1 %v895_v25  ;;  %v238_v47 = vld [vmem:[%s2379_s9 + $0x90] sm:$0xff]  ;;  %v239_v48 = vld [vmem:[%s2379_s9 + $0x98] sm:$0xff]  ;;  %v240_v49 = vld [vmem:[%s2379_s9 + $0xa0] sm:$0xff] }
  0x40   : > { %1800 = vmatprep.subr.mxu0 %v291_v9  ;;  %1922 = vmatprep.subr.mxu1 %v894_v26  ;;  %v241_v50 = vld [vmem:[%s2379_s9 + $0xa8] sm:$0xff]  ;;  %v242_v51 = vld [vmem:[%s2379_s9 + $0xb0] sm:$0xff]  ;;  %v243_v52 = vld [vmem:[%s2379_s9 + $0xb8] sm:$0xff] }
  0x41   : > { %1801 = vmatpush3.msra.mxu0 %v291_v9  ;;  %1923 = vmatpush3.msra.mxu1 %v894_v26  ;;  %v244_v53 = vld [vmem:[%s2379_s9 + $0xc0] sm:$0xff]  ;;  %v245_v54 = vld [vmem:[%s2379_s9 + $0xc8] sm:$0xff]  ;;  %v246_v55 = vld [vmem:[%s2379_s9 + $0xd0] sm:$0xff] }
  0x42   : > { %1802 = vmatprep.subr.mxu0 %v290_v10  ;;  %1924 = vmatprep.subr.mxu1 %v893_v29  ;;  %v247_v56 = vld [vmem:[%s2379_s9 + $0xd8] sm:$0xff]  ;;  %v248_v57 = vld [vmem:[%s2379_s9 + $0xe0] sm:$0xff]  ;;  %v249_v58 = vld [vmem:[%s2379_s9 + $0xe8] sm:$0xff] }
  0x43   : > { %1803 = vmatpush3.msra.mxu0 %v290_v10  ;;  %1925 = vmatpush3.msra.mxu1 %v893_v29  ;;  %v250_v59 = vld [vmem:[%s2379_s9 + $0xf0] sm:$0xff]  ;;  %v251_v60 = vld [vmem:[%s2379_s9 + $0xf8] sm:$0xff]  ;;  %v252_v61 = vld [vmem:[%s2379_s9 + $0x100] sm:$0xff] }
  0x44   : > { %1804 = vmatprep.subr.mxu0 %v289_v11  ;;  %1926 = vmatprep.subr.mxu1 %v892_v30  ;;  %v253_v62 = vld [vmem:[%s2379_s9 + $0x108] sm:$0xff]  ;;  %v254_v63 = vld [vmem:[%s2379_s9 + $0x110] sm:$0xff]  ;;  %v255_v1 = vld [vmem:[%s2379_s9 + $0x118] sm:$0xff] }
  0x45   : > { %1805 = vmatpush3.msra.mxu0 %v289_v11  ;;  %1927 = vmatpush3.msra.mxu1 %v892_v30  ;;  %v886_v0 = vld [vmem:[%s2882_s3 + $0x10] sm:$0xff]  ;;  %v885_v2 = vld [vmem:[%s2882_s3 + $0x8] sm:$0xff]  ;;  %v256_v3 = vld [vmem:[%s2379_s9 + $0x120] sm:$0xff] }
  0x46   : > { %1806 = vmatprep.subr.mxu0 %v288_v12  ;;  %1928 = vmatprep.subr.mxu1 %v891_v33  ;;  %v884_v4 = vld [vmem:[%s2882_s3] sm:$0xff]  ;;  %v257_v5 = vld [vmem:[%s2379_s9 + $0x128] sm:$0xff]  ;;  %v258_v6 = vld [vmem:[%s2379_s9 + $0x130] sm:$0xff] }
  0x47   : > { %1807 = vmatpush3.msra.mxu0 %v288_v12  ;;  %1929 = vmatpush3.msra.mxu1 %v891_v33  ;;  %v259_v7 = vld [vmem:[%s2379_s9 + $0x138] sm:$0xff]  ;;  %v260_v8 = vld [vmem:[%s2379_s9 + $0x140] sm:$0xff]  ;;  %v261_v9 = vld [vmem:[%s2379_s9 + $0x148] sm:$0xff] }
  0x48   : > { %1808 = vmatprep.subr.mxu0 %v287_v13  ;;  %1930 = vmatprep.subr.mxu1 %v890_v34  ;;  %v262_v10 = vld [vmem:[%s2379_s9 + $0x150] sm:$0xff]  ;;  %v263_v11 = vld [vmem:[%s2379_s9 + $0x158] sm:$0xff]  ;;  %v264_v12 = vld [vmem:[%s2379_s9 + $0x160] sm:$0xff] }
  0x49   : > { %1809 = vmatpush3.msra.mxu0 %v287_v13  ;;  %1931 = vmatpush3.msra.mxu1 %v890_v34  ;;  %v265_v13 = vld [vmem:[%s2379_s9 + $0x168] sm:$0xff]  ;;  %v270_v18 = vld [vmem:[%s2379_s9 + $0x190] sm:$0xff] }
  0x4a   : > { %1810 = vmatprep.subr.mxu0 %v286_v14  ;;  %1932 = vmatprep.subr.mxu1 %v889_v37  ;;  %v269_v17 = vld [vmem:[%s2379_s9 + $0x188] sm:$0xff]  ;;  %v274_v22 = vld [vmem:[%s2379_s9 + $0x1b0] sm:$0xff] }
  0x4b   : > { %1811 = vmatpush3.msra.mxu0 %v286_v14  ;;  %1933 = vmatpush3.msra.mxu1 %v889_v37  ;;  %v266_v14 = vld [vmem:[%s2379_s9 + $0x170] sm:$0xff]  ;;  %v273_v21 = vld [vmem:[%s2379_s9 + $0x1a8] sm:$0xff] }
  0x4c   : > { %1812 = vmatprep.subr.mxu0 %v285_v15  ;;  %1934 = vmatprep.subr.mxu1 %v888_v38  ;;  %v277_v25 = vld [vmem:[%s2379_s9 + $0x1c8] sm:$0xff]  ;;  %v278_v26 = vld [vmem:[%s2379_s9 + $0x1d0] sm:$0xff] }
  0x4d   : > { %1813 = vmatpush3.msra.mxu0 %v285_v15  ;;  %1935 = vmatpush3.msra.mxu1 %v888_v38  ;;  %v267_v15 = vld [vmem:[%s2379_s9 + $0x178] sm:$0xff]  ;;  %v281_v29 = vld [vmem:[%s2379_s9 + $0x1e8] sm:$0xff]  ;;  %v282_v30 = vld [vmem:[%s2379_s9 + $0x1f0] sm:$0xff] }
  0x4e   : > { %1814 = vmatprep.subr.mxu0 %v284_v16  ;;  %1936 = vmatprep.subr.mxu1 %v887_v41 }
  0x4f   : > { %1815 = vmatpush3.msra.mxu0 %v284_v16  ;;  %1937 = vmatpush3.msra.mxu1 %v887_v41  ;;  %v268_v16 = vld [vmem:[%s2379_s9 + $0x180] sm:$0xff] }
  0x50   : > { %1817 = vmatmul.mubr.f32.vlgmr.msra.gmra.mxu0 %v221_v19  ;;  %1938 = vmatprep.subr.mxu1 %v886_v0  ;;  %v271_v19 = vld [vmem:[%s2379_s9 + $0x198] sm:$0xff] }
  0x51   : > { %1819 = vmatprep.mubr.f32.mxu0 %v222_v20  ;;  %1939 = vmatpush3.msra.mxu1 %v886_v0  ;;  %v272_v20 = vld [vmem:[%s2379_s9 + $0x1a0] sm:$0xff] }
  0x52   : > { %1940 = vmatprep.subr.mxu1 %v885_v2 }
  0x53   : > { %1941 = vmatpush3.msra.mxu1 %v885_v2 }
  0x54   : > { %1820 = vmatmul.mubr.f32.gmra.mxu0 %v223_v23  ;;  %1942 = vmatprep.subr.mxu1 %v884_v4  ;;  %v275_v23 = vld [vmem:[%s2379_s9 + $0x1b8] sm:$0xff] }
  0x55   : > { %1822 = vmatprep.mubr.f32.mxu0 %v224_v24  ;;  %1943 = vmatpush3.msra.mxu1 %v884_v4  ;;  %v276_v24 = vld [vmem:[%s2379_s9 + $0x1c0] sm:$0xff] }
  0x58   : > { %1823 = vmatmul.mubr.f32.gmra.mxu0 %v225_v27  ;;  %v279_v27 = vld [vmem:[%s2379_s9 + $0x1d8] sm:$0xff] }
  0x59   : > { %1825 = vmatprep.mubr.f32.mxu0 %v226_v28  ;;  %v280_v28 = vld [vmem:[%s2379_s9 + $0x1e0] sm:$0xff] }
  0x5c   : > { %1826 = vmatmul.mubr.f32.gmra.mxu0 %v227_v31  ;;  %v283_v31 = vld [vmem:[%s2379_s9 + $0x1f8] sm:$0xff]  ;;  %s1618_s9 = sshll.u32 %s1609_s19, 6 }
  0x5d   : > { %1828 = vmatprep.mubr.f32.mxu0 %v228_v32  ;;  %v2548_v32 = vld [vmem:[%s2881_s2] ss:$0 sm:$0xff]  ;;  %p215_p8 = scmp.lt.s32.totalorder %s1618_s9, 127 }
  0x5f   : > { %s2894_s9 = smov (!%p215_p8, %s1618_s9), 127 }
  0x60   : > { %1829 = vmatmul.mubr.f32.gmra.mxu0 %v229_v35  ;;  %s1619_s18 = sshll.u32 %s2894_s9, 3 }
  0x61   : > { %1831 = vmatprep.mubr.f32.mxu0 %v230_v36  ;;  %s2653_s15 = scalar_lea.vmem %s2883_s4, %s1619_s18 }
  0x64   : > { %1832 = vmatmul.mubr.f32.gmra.mxu0 %v231_v39 }
  0x65   : > { %1834 = vmatprep.mubr.f32.mxu0 %v232_v40 }
  0x68   : > { %1835 = vmatmul.mubr.f32.gmra.mxu0 %v233_v42 }
  0x69   : > { %1837 = vmatprep.mubr.f32.mxu0 %v234_v43 }
  0x6c   : > { %1838 = vmatmul.mubr.f32.gmra.mxu0 %v235_v44 }
  0x6d   : > { %1840 = vmatprep.mubr.f32.mxu0 %v236_v45 }
  0x70   : > { %1841 = vmatmul.mubr.f32.gmra.mxu0 %v237_v46 }
  0x71   : > { %1843 = vmatprep.mubr.f32.mxu0 %v238_v47 }
  0x74   : > { %1844 = vmatmul.mubr.f32.gmra.mxu0 %v239_v48 }
  0x75   : > { %1846 = vmatprep.mubr.f32.mxu0 %v240_v49 }
  0x78   : > { %1847 = vmatmul.mubr.f32.gmra.mxu0 %v241_v50 }
  0x79   : > { %1849 = vmatprep.mubr.f32.mxu0 %v242_v51 }
  0x7c   : > { %1850 = vmatmul.mubr.f32.gmra.mxu0 %v243_v52 }
  0x7d   : > { %1852 = vmatprep.mubr.f32.mxu0 %v244_v53 }
  0x80   : > { %1853 = vmatmul.mubr.f32.gmra.mxu0 %v245_v54 }
  0x81   : > { %1855 = vmatprep.mubr.f32.mxu0 %v246_v55 }
  0x84   : > { %1856 = vmatmul.mubr.f32.gmra.mxu0 %v247_v56 }
  0x85   : > { %1858 = vmatprep.mubr.f32.mxu0 %v248_v57 }
  0x88   : > { %1859 = vmatmul.mubr.f32.gmra.mxu0 %v249_v58 }
  0x89   : > { %1861 = vmatprep.mubr.f32.mxu0 %v250_v59 }
  0x8c   : > { %1862 = vmatmul.mubr.f32.gmra.mxu0 %v251_v60 }
  0x8d   : > { %1864 = vmatprep.mubr.f32.mxu0 %v252_v61 }
  0x90   : > { %1865 = vmatmul.mubr.f32.gmra.mxu0 %v253_v62 }
  0x91   : > { %1867 = vmatprep.mubr.f32.mxu0 %v254_v63 }
  0x94   : > { %1868 = vmatmul.mubr.f32.gmra.mxu0 %v255_v1 }
  0x95   : > { %1870 = vmatprep.mubr.f32.mxu0 %v256_v3 }
  0x98   : > { %1871 = vmatmul.mubr.f32.gmra.mxu0 %v257_v5 }
  0x99   : > { %1873 = vmatprep.mubr.f32.mxu0 %v258_v6 }
  0x9c   : > { %1874 = vmatmul.mubr.f32.gmra.mxu0 %v259_v7 }
  0x9d   : > { %1876 = vmatprep.mubr.f32.mxu0 %v260_v8 }
  0xa0   : > { %1877 = vmatmul.mubr.f32.gmra.mxu0 %v261_v9 }
  0xa1   : > { %1879 = vmatprep.mubr.f32.mxu0 %v262_v10 }
  0xa4   : > { %1880 = vmatmul.mubr.f32.gmra.mxu0 %v263_v11 }
  0xa5   : > { %1882 = vmatprep.mubr.f32.mxu0 %v264_v12 }
  0xa8   : > { %1883 = vmatmul.mubr.f32.gmra.mxu0 %v265_v13 }
  0xa9   : > { %1885 = vmatprep.mubr.f32.mxu0 %v266_v14 }
  0xac   : > { %1886 = vmatmul.mubr.f32.gmra.mxu0 %v267_v15 }
  0xad   : > { %1888 = vmatprep.mubr.f32.mxu0 %v268_v16 }
  0xb0   : > { %1889 = vmatmul.mubr.f32.gmra.mxu0 %v269_v17 }
  0xb1   : > { %1891 = vmatprep.mubr.f32.mxu0 %v270_v18 }
  0xb4   : > { %1892 = vmatmul.mubr.f32.gmra.mxu0 %v271_v19 }
  0xb5   : > { %1894 = vmatprep.mubr.f32.mxu0 %v272_v20 }
  0xb8   : > { %1895 = vmatmul.mubr.f32.gmra.mxu0 %v273_v21 }
  0xb9   : > { %1897 = vmatprep.mubr.f32.mxu0 %v274_v22 }
  0xbc   : > { %1898 = vmatmul.mubr.f32.gmra.mxu0 %v275_v23 }
  0xbd   : > { %1900 = vmatprep.mubr.f32.mxu0 %v276_v24 }
  0xc0   : > { %1901 = vmatmul.mubr.f32.gmra.mxu0 %v277_v25 }
  0xc1   : > { %1903 = vmatprep.mubr.f32.mxu0 %v278_v26 }
  0xc4   : > { %1904 = vmatmul.mubr.f32.gmra.mxu0 %v279_v27 }
  0xc5   : > { %1906 = vmatprep.mubr.f32.mxu0 %v280_v28 }
  0xc8   : > { %1907 = vmatmul.mubr.f32.gmra.mxu0 %v281_v29 }
  0xc9   : > { %1909 = vmatprep.mubr.f32.mxu0 %v282_v30 }
  0xcc   : > { %1910 = vmatmul.mubr.f32.gmra.mxu0 %v283_v31 }
 0x110   : > { %v1818_v33 = vpop.f32.mrf.mxu0 }
 0x111   : > { %v379_v34 = vadd.f32 %v1818_v33, %v2548_v32 }
 0x112   : > { %v373_v35 = vpop.f32.mrf.mxu0 }
 0x113   : > { %v374_v36 = vadd.f32 %v2548_v32, %v373_v35  ;;  %v693_v37 = vmul.f32 %v379_v34, %v379_v34 }
 0x114   : > { %v1821_v38 = vpop.f32.mrf.mxu0 }
 0x115   : > { %v389_v39 = vadd.f32 %v1821_v38, %v2548_v32  ;;  %758 = vadd.xlane.f32.xlu0 %v693_v37  ;;  %1944 = vmatprep.mubr.f32.mxu1 %v374_v36  ;;  %v692_v44 = vmul.f32 %v374_v36, %v374_v36 }
 0x116   : > { %v383_v40 = vpop.f32.mrf.mxu0  ;;  %1945 = vmatmul.mubr.f32.vlgmr.msra.gmra.mxu1 %v379_v34 }
 0x117   : > { %v384_v41 = vadd.f32 %v2548_v32, %v383_v40  ;;  %v695_v42 = vmul.f32 %v389_v39, %v389_v39 }
 0x118   : > { %v1824_v43 = vpop.f32.mrf.mxu0 }
 0x119   : > { %762 = vadd.xlane.f32.xlu1 %v695_v42  ;;  %1947 = vmatprep.mubr.f32.mxu1 %v384_v41  ;;  %v399_v46 = vadd.f32 %v1824_v43, %v2548_v32  ;;  %v694_v48 = vmul.f32 %v384_v41, %v384_v41 }
 0x11a   : > { %756 = vadd.xlane.f32.xlu0 %v692_v44  ;;  %v393_v45 = vpop.f32.mrf.mxu0  ;;  %1948 = vmatmul.mubr.f32.gmra.mxu1 %v389_v39 }
 0x11b   : > { %v394_v47 = vadd.f32 %v2548_v32, %v393_v45  ;;  %v697_v54 = vmul.f32 %v399_v46, %v399_v46 }
 0x11c   : > { %v1827_v49 = vpop.f32.mrf.mxu0 }
 0x11d   : > { %760 = vadd.xlane.f32.xlu1 %v694_v48  ;;  %1950 = vmatprep.mubr.f32.mxu1 %v394_v47  ;;  %v696_v50 = vmul.f32 %v394_v47, %v394_v47  ;;  %v409_v52 = vadd.f32 %v1827_v49, %v2548_v32 }
 0x11e   : > { %v403_v51 = vpop.f32.mrf.mxu0  ;;  %1951 = vmatmul.mubr.f32.gmra.mxu1 %v399_v46 }
 0x11f   : > { %v404_v53 = vadd.f32 %v2548_v32, %v403_v51  ;;  %764 = vadd.xlane.f32.xlu0 %v696_v50  ;;  %v699_v60 = vmul.f32 %v409_v52, %v409_v52 }
 0x120   : > { %v1830_v55 = vpop.f32.mrf.mxu0 }
 0x121   : > { %766 = vadd.xlane.f32.xlu1 %v697_v54  ;;  %1953 = vmatprep.mubr.f32.mxu1 %v404_v53  ;;  %v698_v56 = vmul.f32 %v404_v53, %v404_v53  ;;  %v419_v58 = vadd.f32 %v1830_v55, %v2548_v32 }
 0x122   : > { %v413_v57 = vpop.f32.mrf.mxu0  ;;  %1954 = vmatmul.mubr.f32.gmra.mxu1 %v409_v52 }
 0x123   : > { %v414_v59 = vadd.f32 %v2548_v32, %v413_v57  ;;  %768 = vadd.xlane.f32.xlu0 %v698_v56  ;;  %v701_v2 = vmul.f32 %v419_v58, %v419_v58 }
 0x124   : > { %v1833_v61 = vpop.f32.mrf.mxu0 }
 0x125   : > { %770 = vadd.xlane.f32.xlu1 %v699_v60  ;;  %1956 = vmatprep.mubr.f32.mxu1 %v414_v59  ;;  %v700_v62 = vmul.f32 %v414_v59, %v414_v59  ;;  %v429_v0 = vadd.f32 %v1833_v61, %v2548_v32 }
 0x126   : > { %v423_v63 = vpop.f32.mrf.mxu0  ;;  %1957 = vmatmul.mubr.f32.gmra.mxu1 %v419_v58 }
 0x127   : > { %v424_v1 = vadd.f32 %v2548_v32, %v423_v63  ;;  %772 = vadd.xlane.f32.xlu0 %v700_v62  ;;  %v703_v8 = vmul.f32 %v429_v0, %v429_v0 }
 0x128   : > { %v1836_v3 = vpop.f32.mrf.mxu0 }
 0x129   : > { %774 = vadd.xlane.f32.xlu1 %v701_v2  ;;  %1959 = vmatprep.mubr.f32.mxu1 %v424_v1  ;;  %v702_v4 = vmul.f32 %v424_v1, %v424_v1  ;;  %v439_v6 = vadd.f32 %v1836_v3, %v2548_v32 }
 0x12a   : > { %v433_v5 = vpop.f32.mrf.mxu0  ;;  %1960 = vmatmul.mubr.f32.gmra.mxu1 %v429_v0 }
 0x12b   : > { %v434_v7 = vadd.f32 %v2548_v32, %v433_v5  ;;  %776 = vadd.xlane.f32.xlu0 %v702_v4  ;;  %v705_v14 = vmul.f32 %v439_v6, %v439_v6 }
 0x12c   : > { %v1839_v9 = vpop.f32.mrf.mxu0 }
 0x12d   : > { %778 = vadd.xlane.f32.xlu1 %v703_v8  ;;  %1962 = vmatprep.mubr.f32.mxu1 %v434_v7  ;;  %v704_v10 = vmul.f32 %v434_v7, %v434_v7  ;;  %v449_v12 = vadd.f32 %v1839_v9, %v2548_v32 }
 0x12e   : > { %v443_v11 = vpop.f32.mrf.mxu0  ;;  %1963 = vmatmul.mubr.f32.gmra.mxu1 %v439_v6 }
 0x12f   : > { %v444_v13 = vadd.f32 %v2548_v32, %v443_v11  ;;  %780 = vadd.xlane.f32.xlu0 %v704_v10  ;;  %v707_v20 = vmul.f32 %v449_v12, %v449_v12 }
 0x130   : > { %v1842_v15 = vpop.f32.mrf.mxu0 }
 0x131   : > { %782 = vadd.xlane.f32.xlu1 %v705_v14  ;;  %1965 = vmatprep.mubr.f32.mxu1 %v444_v13  ;;  %v706_v16 = vmul.f32 %v444_v13, %v444_v13  ;;  %v459_v18 = vadd.f32 %v1842_v15, %v2548_v32 }
 0x132   : > { %v453_v17 = vpop.f32.mrf.mxu0  ;;  %1966 = vmatmul.mubr.f32.gmra.mxu1 %v449_v12 }
 0x133   : > { %v454_v19 = vadd.f32 %v2548_v32, %v453_v17  ;;  %784 = vadd.xlane.f32.xlu0 %v706_v16  ;;  %v709_v26 = vmul.f32 %v459_v18, %v459_v18 }
 0x134   : > { %v1845_v21 = vpop.f32.mrf.mxu0 }
 0x135   : > { %786 = vadd.xlane.f32.xlu1 %v707_v20  ;;  %1968 = vmatprep.mubr.f32.mxu1 %v454_v19  ;;  %v708_v22 = vmul.f32 %v454_v19, %v454_v19  ;;  %v469_v24 = vadd.f32 %v1845_v21, %v2548_v32 }
 0x136   : > { %v463_v23 = vpop.f32.mrf.mxu0  ;;  %1969 = vmatmul.mubr.f32.gmra.mxu1 %v459_v18 }
 0x137   : > { %v464_v25 = vadd.f32 %v2548_v32, %v463_v23  ;;  %788 = vadd.xlane.f32.xlu0 %v708_v22  ;;  %v711_v33 = vmul.f32 %v469_v24, %v469_v24 }
 0x138   : > { %v1848_v27 = vpop.f32.mrf.mxu0 }
 0x139   : > { %790 = vadd.xlane.f32.xlu1 %v709_v26  ;;  %1971 = vmatprep.mubr.f32.mxu1 %v464_v25  ;;  %v710_v28 = vmul.f32 %v464_v25, %v464_v25  ;;  %v479_v30 = vadd.f32 %v1848_v27, %v2548_v32 }
 0x13a   : > { %v473_v29 = vpop.f32.mrf.mxu0  ;;  %1972 = vmatmul.mubr.f32.gmra.mxu1 %v469_v24 }
 0x13b   : > { %v474_v31 = vadd.f32 %v2548_v32, %v473_v29  ;;  %792 = vadd.xlane.f32.xlu0 %v710_v28  ;;  %v713_v39 = vmul.f32 %v479_v30, %v479_v30 }
 0x13c   : > { %v1851_v34 = vpop.f32.mrf.mxu0 }
 0x13d   : > { %794 = vadd.xlane.f32.xlu1 %v711_v33  ;;  %1974 = vmatprep.mubr.f32.mxu1 %v474_v31  ;;  %v712_v35 = vmul.f32 %v474_v31, %v474_v31  ;;  %v489_v37 = vadd.f32 %v1851_v34, %v2548_v32 }
 0x13e   : > { %v483_v36 = vpop.f32.mrf.mxu0  ;;  %1975 = vmatmul.mubr.f32.gmra.mxu1 %v479_v30 }
 0x13f   : > { %v484_v38 = vadd.f32 %v2548_v32, %v483_v36  ;;  %796 = vadd.xlane.f32.xlu0 %v712_v35  ;;  %v715_v45 = vmul.f32 %v489_v37, %v489_v37 }
 0x140   : > { %v1854_v40 = vpop.f32.mrf.mxu0 }
 0x141   : > { %798 = vadd.xlane.f32.xlu1 %v713_v39  ;;  %1977 = vmatprep.mubr.f32.mxu1 %v484_v38  ;;  %v714_v41 = vmul.f32 %v484_v38, %v484_v38  ;;  %v499_v43 = vadd.f32 %v1854_v40, %v2548_v32 }
 0x142   : > { %v493_v42 = vpop.f32.mrf.mxu0  ;;  %1978 = vmatmul.mubr.f32.gmra.mxu1 %v489_v37 }
 0x143   : > { %v494_v44 = vadd.f32 %v2548_v32, %v493_v42  ;;  %800 = vadd.xlane.f32.xlu0 %v714_v41  ;;  %v717_v51 = vmul.f32 %v499_v43, %v499_v43 }
 0x144   : > { %v1857_v46 = vpop.f32.mrf.mxu0 }
 0x145   : > { %802 = vadd.xlane.f32.xlu1 %v715_v45  ;;  %1980 = vmatprep.mubr.f32.mxu1 %v494_v44  ;;  %v716_v47 = vmul.f32 %v494_v44, %v494_v44  ;;  %v509_v49 = vadd.f32 %v1857_v46, %v2548_v32 }
 0x146   : > { %v503_v48 = vpop.f32.mrf.mxu0  ;;  %1981 = vmatmul.mubr.f32.gmra.mxu1 %v499_v43 }
 0x147   : > { %v504_v50 = vadd.f32 %v2548_v32, %v503_v48  ;;  %804 = vadd.xlane.f32.xlu0 %v716_v47  ;;  %v719_v57 = vmul.f32 %v509_v49, %v509_v49 }
 0x148   : > { %v1860_v52 = vpop.f32.mrf.mxu0 }
 0x149   : > { %806 = vadd.xlane.f32.xlu1 %v717_v51  ;;  %1983 = vmatprep.mubr.f32.mxu1 %v504_v50  ;;  %v718_v53 = vmul.f32 %v504_v50, %v504_v50  ;;  %v519_v55 = vadd.f32 %v1860_v52, %v2548_v32 }
 0x14a   : > { %v513_v54 = vpop.f32.mrf.mxu0  ;;  %1984 = vmatmul.mubr.f32.gmra.mxu1 %v509_v49 }
 0x14b   : > { %v514_v56 = vadd.f32 %v2548_v32, %v513_v54  ;;  %808 = vadd.xlane.f32.xlu0 %v718_v53  ;;  %v721_v63 = vmul.f32 %v519_v55, %v519_v55 }
 0x14c   : > { %v1863_v58 = vpop.f32.mrf.mxu0 }
 0x14d   : > { %810 = vadd.xlane.f32.xlu1 %v719_v57  ;;  %1986 = vmatprep.mubr.f32.mxu1 %v514_v56  ;;  %v720_v59 = vmul.f32 %v514_v56, %v514_v56  ;;  %v529_v61 = vadd.f32 %v1863_v58, %v2548_v32 }
 0x14e   : > { %v523_v60 = vpop.f32.mrf.mxu0  ;;  %1987 = vmatmul.mubr.f32.gmra.mxu1 %v519_v55 }
 0x14f   : > { %v524_v62 = vadd.f32 %v2548_v32, %v523_v60  ;;  %812 = vadd.xlane.f32.xlu0 %v720_v59  ;;  %v723_v5 = vmul.f32 %v529_v61, %v529_v61 }
 0x150   : > { %v1866_v0 = vpop.f32.mrf.mxu0 }
 0x151   : > { %814 = vadd.xlane.f32.xlu1 %v721_v63  ;;  %1989 = vmatprep.mubr.f32.mxu1 %v524_v62  ;;  %v722_v1 = vmul.f32 %v524_v62, %v524_v62  ;;  %v539_v3 = vadd.f32 %v1866_v0, %v2548_v32 }
 0x152   : > { %v533_v2 = vpop.f32.mrf.mxu0  ;;  %1990 = vmatmul.mubr.f32.gmra.mxu1 %v529_v61 }
 0x153   : > { %v534_v4 = vadd.f32 %v2548_v32, %v533_v2  ;;  %816 = vadd.xlane.f32.xlu0 %v722_v1  ;;  %v725_v11 = vmul.f32 %v539_v3, %v539_v3 }
 0x154   : > { %v1869_v6 = vpop.f32.mrf.mxu0 }
 0x155   : > { %818 = vadd.xlane.f32.xlu1 %v723_v5  ;;  %1992 = vmatprep.mubr.f32.mxu1 %v534_v4  ;;  %v724_v7 = vmul.f32 %v534_v4, %v534_v4  ;;  %v549_v9 = vadd.f32 %v1869_v6, %v2548_v32 }
 0x156   : > { %v543_v8 = vpop.f32.mrf.mxu0  ;;  %1993 = vmatmul.mubr.f32.gmra.mxu1 %v539_v3 }
 0x157   : > { %v544_v10 = vadd.f32 %v2548_v32, %v543_v8  ;;  %820 = vadd.xlane.f32.xlu0 %v724_v7  ;;  %v727_v17 = vmul.f32 %v549_v9, %v549_v9 }
 0x158   : > { %v1872_v12 = vpop.f32.mrf.mxu0 }
 0x159   : > { %822 = vadd.xlane.f32.xlu1 %v725_v11  ;;  %1995 = vmatprep.mubr.f32.mxu1 %v544_v10  ;;  %v726_v13 = vmul.f32 %v544_v10, %v544_v10  ;;  %v559_v15 = vadd.f32 %v1872_v12, %v2548_v32 }
 0x15a   : > { %v553_v14 = vpop.f32.mrf.mxu0  ;;  %1996 = vmatmul.mubr.f32.gmra.mxu1 %v549_v9 }
 0x15b   : > { %v554_v16 = vadd.f32 %v2548_v32, %v553_v14  ;;  %824 = vadd.xlane.f32.xlu0 %v726_v13  ;;  %v729_v23 = vmul.f32 %v559_v15, %v559_v15 }
 0x15c   : > { %v1875_v18 = vpop.f32.mrf.mxu0 }
 0x15d   : > { %826 = vadd.xlane.f32.xlu1 %v727_v17  ;;  %1998 = vmatprep.mubr.f32.mxu1 %v554_v16  ;;  %v728_v19 = vmul.f32 %v554_v16, %v554_v16  ;;  %v569_v21 = vadd.f32 %v1875_v18, %v2548_v32 }
 0x15e   : > { %v563_v20 = vpop.f32.mrf.mxu0  ;;  %1999 = vmatmul.mubr.f32.gmra.mxu1 %v559_v15 }
 0x15f   : > { %v564_v22 = vadd.f32 %v2548_v32, %v563_v20  ;;  %828 = vadd.xlane.f32.xlu0 %v728_v19  ;;  %v731_v29 = vmul.f32 %v569_v21, %v569_v21 }
 0x160   : > { %v1878_v24 = vpop.f32.mrf.mxu0 }
 0x161   : > { %830 = vadd.xlane.f32.xlu1 %v729_v23  ;;  %2001 = vmatprep.mubr.f32.mxu1 %v564_v22  ;;  %v730_v25 = vmul.f32 %v564_v22, %v564_v22  ;;  %v579_v27 = vadd.f32 %v1878_v24, %v2548_v32 }
 0x162   : > { %v573_v26 = vpop.f32.mrf.mxu0  ;;  %2002 = vmatmul.mubr.f32.gmra.mxu1 %v569_v21 }
 0x163   : > { %v574_v28 = vadd.f32 %v2548_v32, %v573_v26  ;;  %832 = vadd.xlane.f32.xlu0 %v730_v25  ;;  %v733_v36 = vmul.f32 %v579_v27, %v579_v27 }
 0x164   : > { %v1881_v30 = vpop.f32.mrf.mxu0 }
 0x165   : > { %834 = vadd.xlane.f32.xlu1 %v731_v29  ;;  %2004 = vmatprep.mubr.f32.mxu1 %v574_v28  ;;  %v732_v31 = vmul.f32 %v574_v28, %v574_v28  ;;  %v589_v34 = vadd.f32 %v1881_v30, %v2548_v32 }
 0x166   : > { %v583_v33 = vpop.f32.mrf.mxu0  ;;  %2005 = vmatmul.mubr.f32.gmra.mxu1 %v579_v27 }
 0x167   : > { %v584_v35 = vadd.f32 %v2548_v32, %v583_v33  ;;  %836 = vadd.xlane.f32.xlu0 %v732_v31  ;;  %v735_v42 = vmul.f32 %v589_v34, %v589_v34 }
 0x168   : > { %v1884_v37 = vpop.f32.mrf.mxu0 }
 0x169   : > { %838 = vadd.xlane.f32.xlu1 %v733_v36  ;;  %2007 = vmatprep.mubr.f32.mxu1 %v584_v35  ;;  %v734_v38 = vmul.f32 %v584_v35, %v584_v35  ;;  %v599_v40 = vadd.f32 %v1884_v37, %v2548_v32 }
 0x16a   : > { %v593_v39 = vpop.f32.mrf.mxu0  ;;  %2008 = vmatmul.mubr.f32.gmra.mxu1 %v589_v34 }
 0x16b   : > { %v594_v41 = vadd.f32 %v2548_v32, %v593_v39  ;;  %840 = vadd.xlane.f32.xlu0 %v734_v38  ;;  %v737_v48 = vmul.f32 %v599_v40, %v599_v40 }
 0x16c   : > { %v1887_v43 = vpop.f32.mrf.mxu0 }
 0x16d   : > { %842 = vadd.xlane.f32.xlu1 %v735_v42  ;;  %2010 = vmatprep.mubr.f32.mxu1 %v594_v41  ;;  %v736_v44 = vmul.f32 %v594_v41, %v594_v41  ;;  %v609_v46 = vadd.f32 %v1887_v43, %v2548_v32 }
 0x16e   : > { %v603_v45 = vpop.f32.mrf.mxu0  ;;  %2011 = vmatmul.mubr.f32.gmra.mxu1 %v599_v40 }
 0x16f   : > { %v604_v47 = vadd.f32 %v2548_v32, %v603_v45  ;;  %844 = vadd.xlane.f32.xlu0 %v736_v44  ;;  %v739_v54 = vmul.f32 %v609_v46, %v609_v46 }
 0x170   : > { %v1890_v49 = vpop.f32.mrf.mxu0 }
 0x171   : > { %846 = vadd.xlane.f32.xlu1 %v737_v48  ;;  %2013 = vmatprep.mubr.f32.mxu1 %v604_v47  ;;  %v738_v50 = vmul.f32 %v604_v47, %v604_v47  ;;  %v619_v52 = vadd.f32 %v1890_v49, %v2548_v32 }
 0x172   : > { %v613_v51 = vpop.f32.mrf.mxu0  ;;  %2014 = vmatmul.mubr.f32.gmra.mxu1 %v609_v46 }
 0x173   : > { %v614_v53 = vadd.f32 %v2548_v32, %v613_v51  ;;  %848 = vadd.xlane.f32.xlu0 %v738_v50  ;;  %v741_v60 = vmul.f32 %v619_v52, %v619_v52 }
 0x174   : > { %v1893_v55 = vpop.f32.mrf.mxu0 }
 0x175   : > { %850 = vadd.xlane.f32.xlu1 %v739_v54  ;;  %2016 = vmatprep.mubr.f32.mxu1 %v614_v53  ;;  %v740_v56 = vmul.f32 %v614_v53, %v614_v53  ;;  %v629_v58 = vadd.f32 %v1893_v55, %v2548_v32 }
 0x176   : > { %v623_v57 = vpop.f32.mrf.mxu0  ;;  %2017 = vmatmul.mubr.f32.gmra.mxu1 %v619_v52 }
 0x177   : > { %v624_v59 = vadd.f32 %v2548_v32, %v623_v57  ;;  %852 = vadd.xlane.f32.xlu0 %v740_v56  ;;  %v743_v2 = vmul.f32 %v629_v58, %v629_v58 }
 0x178   : > { %v1896_v61 = vpop.f32.mrf.mxu0 }
 0x179   : > { %854 = vadd.xlane.f32.xlu1 %v741_v60  ;;  %2019 = vmatprep.mubr.f32.mxu1 %v624_v59  ;;  %v742_v62 = vmul.f32 %v624_v59, %v624_v59  ;;  %v639_v0 = vadd.f32 %v1896_v61, %v2548_v32 }
 0x17a   : > { %v633_v63 = vpop.f32.mrf.mxu0  ;;  %2020 = vmatmul.mubr.f32.gmra.mxu1 %v629_v58 }
 0x17b   : > { %v634_v1 = vadd.f32 %v2548_v32, %v633_v63  ;;  %856 = vadd.xlane.f32.xlu0 %v742_v62  ;;  %v745_v8 = vmul.f32 %v639_v0, %v639_v0 }
 0x17c   : > { %v1899_v3 = vpop.f32.mrf.mxu0 }
 0x17d   : > { %858 = vadd.xlane.f32.xlu1 %v743_v2  ;;  %2022 = vmatprep.mubr.f32.mxu1 %v634_v1  ;;  %v744_v4 = vmul.f32 %v634_v1, %v634_v1  ;;  %v649_v6 = vadd.f32 %v1899_v3, %v2548_v32 }
 0x17e   : > { %v643_v5 = vpop.f32.mrf.mxu0  ;;  %2023 = vmatmul.mubr.f32.gmra.mxu1 %v639_v0 }
 0x17f   : > { %v644_v7 = vadd.f32 %v2548_v32, %v643_v5  ;;  %860 = vadd.xlane.f32.xlu0 %v744_v4  ;;  %v747_v14 = vmul.f32 %v649_v6, %v649_v6 }
 0x180   : > { %v1902_v9 = vpop.f32.mrf.mxu0 }
 0x181   : > { %862 = vadd.xlane.f32.xlu1 %v745_v8  ;;  %2025 = vmatprep.mubr.f32.mxu1 %v644_v7  ;;  %v746_v10 = vmul.f32 %v644_v7, %v644_v7  ;;  %v659_v12 = vadd.f32 %v1902_v9, %v2548_v32 }
 0x182   : > { %v653_v11 = vpop.f32.mrf.mxu0  ;;  %2026 = vmatmul.mubr.f32.gmra.mxu1 %v649_v6 }
 0x183   : > { %v654_v13 = vadd.f32 %v2548_v32, %v653_v11  ;;  %864 = vadd.xlane.f32.xlu0 %v746_v10  ;;  %v749_v20 = vmul.f32 %v659_v12, %v659_v12 }
 0x184   : > { %v1905_v15 = vpop.f32.mrf.mxu0 }
 0x185   : > { %866 = vadd.xlane.f32.xlu1 %v747_v14  ;;  %2028 = vmatprep.mubr.f32.mxu1 %v654_v13  ;;  %v748_v16 = vmul.f32 %v654_v13, %v654_v13  ;;  %v669_v18 = vadd.f32 %v1905_v15, %v2548_v32 }
 0x186   : > { %v663_v17 = vpop.f32.mrf.mxu0  ;;  %2029 = vmatmul.mubr.f32.gmra.mxu1 %v659_v12 }
 0x187   : > { %v664_v19 = vadd.f32 %v2548_v32, %v663_v17  ;;  %868 = vadd.xlane.f32.xlu0 %v748_v16  ;;  %v751_v26 = vmul.f32 %v669_v18, %v669_v18 }
 0x188   : > { %v1908_v21 = vpop.f32.mrf.mxu0 }
 0x189   : > { %870 = vadd.xlane.f32.xlu1 %v749_v20  ;;  %2031 = vmatprep.mubr.f32.mxu1 %v664_v19  ;;  %v750_v22 = vmul.f32 %v664_v19, %v664_v19  ;;  %v679_v24 = vadd.f32 %v1908_v21, %v2548_v32 }
 0x18a   : > { %v673_v23 = vpop.f32.mrf.mxu0  ;;  %2032 = vmatmul.mubr.f32.gmra.mxu1 %v669_v18 }
 0x18b   : > { %v674_v25 = vadd.f32 %v2548_v32, %v673_v23  ;;  %872 = vadd.xlane.f32.xlu0 %v750_v22  ;;  %v753_v33 = vmul.f32 %v679_v24, %v679_v24 }
 0x18c   : > { %v1911_v27 = vpop.f32.mrf.mxu0 }
 0x18d   : > { %874 = vadd.xlane.f32.xlu1 %v751_v26  ;;  %2034 = vmatprep.mubr.f32.mxu1 %v674_v25  ;;  %v752_v28 = vmul.f32 %v674_v25, %v674_v25  ;;  %v689_v30 = vadd.f32 %v1911_v27, %v2548_v32 }
 0x18e   : > { %v683_v29 = vpop.f32.mrf.mxu0  ;;  %2035 = vmatmul.mubr.f32.gmra.mxu1 %v679_v24 }
 0x18f   : > { %v684_v31 = vadd.f32 %v2548_v32, %v683_v29  ;;  %876 = vadd.xlane.f32.xlu0 %v752_v28  ;;  %v755_v35 = vmul.f32 %v689_v30, %v689_v30 }
 0x191   : > { %878 = vadd.xlane.f32.xlu1 %v753_v33  ;;  %2037 = vmatprep.mubr.f32.mxu1 %v684_v31  ;;  %v754_v34 = vmul.f32 %v684_v31, %v684_v31 }
 0x192   : > { %2038 = vmatmul.mubr.f32.gmra.mxu1 %v689_v30 }
 0x193   : > { %880 = vadd.xlane.f32.xlu0 %v754_v34 }
 0x195   : > { %882 = vadd.xlane.f32.xlu1 %v755_v35 }
 0x19e   : > { %v759_v36 = vpop.xlane.xlu0 %758 }
 0x19f   : > { %v1286_v54 = vmax.f32 %v759_v36, 1e-24 }
 0x1a1   : > { %2081 = vrsqrt.f32 %v1286_v54 }
 0x1a2   : > { %v763_v37 = vpop.xlane.xlu1 %762 }
 0x1a3   : > { %v757_v38 = vpop.xlane.xlu0 %756  ;;  %v1288_v58 = vmax.f32 %v763_v37, 1e-24 }
 0x1a4   : > { %v1285_v56 = vmax.f32 %v757_v38, 1e-24 }
 0x1a6   : > { %v761_v39 = vpop.xlane.xlu1 %760  ;;  %2083 = vrsqrt.f32 %v1285_v56 }
 0x1a7   : > { %v1287_v60 = vmax.f32 %v761_v39, 1e-24  ;;  %2085 = vrsqrt.f32 %v1288_v58 }
 0x1a8   : > { %v765_v40 = vpop.xlane.xlu0 %764 }
 0x1a9   : > { %2087 = vrsqrt.f32 %v1287_v60  ;;  %v1289_v0 = vmax.f32 %v765_v40, 1e-24 }
 0x1aa   : > { %v767_v41 = vpop.xlane.xlu1 %766 }
 0x1ab   : > { %v1290_v62 = vmax.f32 %v767_v41, 1e-24 }
 0x1ac   : > { %v769_v42 = vpop.xlane.xlu0 %768 }
 0x1ad   : > { %2089 = vrsqrt.f32 %v1290_v62  ;;  %v1291_v4 = vmax.f32 %v769_v42, 1e-24 }
 0x1ae   : > { %v771_v43 = vpop.xlane.xlu1 %770  ;;  %2091 = vrsqrt.f32 %v1289_v0  ;;  %v2082_v7 = vpop.eup %2081 }
 0x1af   : > { %v1292_v2 = vmax.f32 %v771_v43, 1e-24 }
 0x1b0   : > { %v773_v44 = vpop.xlane.xlu0 %772 }
 0x1b1   : > { %2093 = vrsqrt.f32 %v1292_v2  ;;  %v1293_v10 = vmax.f32 %v773_v44, 1e-24 }
 0x1b2   : > { %v775_v32 = vpop.xlane.xlu1 %774  ;;  %2095 = vrsqrt.f32 %v1291_v4 }
 0x1b3   : > { %v1294_v6 = vmax.f32 %v775_v32, 1e-24  ;;  %v2084_v12 = vpop.eup %2083 }
 0x1b4   : > { %v2614_v45 = vpop.xlane.xlu0 %776  ;;  %v2086_v17 = vpop.eup %2085 }
 0x1b5   : > { %2097 = vrsqrt.f32 %v1294_v6  ;;  %v1295_v20 = vmax.f32 %v2614_v45, 1e-24 }
 0x1b6   : > { %v779_v46 = vpop.xlane.xlu1 %778  ;;  %2099 = vrsqrt.f32 %v1293_v10  ;;  %v2088_v22 = vpop.eup %2087 }
 0x1b7   : > { %v1296_v14 = vmax.f32 %v779_v46, 1e-24 }
 0x1b8   : > { %v2616_v47 = vpop.xlane.xlu0 %780 }
 0x1b9   : > { %2101 = vrsqrt.f32 %v1296_v14  ;;  %v1297_v29 = vmax.f32 %v2616_v47, 1e-24 }
 0x1ba   : > { %v2618_v48 = vpop.xlane.xlu1 %782  ;;  %v2090_v26 = vpop.eup %2089  ;;  %2103 = vrsqrt.f32 %v1295_v20 }
 0x1bb   : > { %v1298_v24 = vmax.f32 %v2618_v48, 1e-24  ;;  %v2092_v31 = vpop.eup %2091 }
 0x1bc   : > { %v2620_v49 = vpop.xlane.xlu0 %784 }
 0x1bd   : > { %2105 = vrsqrt.f32 %v1298_v24  ;;  %v1299_v39 = vmax.f32 %v2620_v49, 1e-24 }
 0x1be   : > { %v2622_v50 = vpop.xlane.xlu1 %786  ;;  %v2094_v37 = vpop.eup %2093  ;;  %2107 = vrsqrt.f32 %v1297_v29 }
 0x1bf   : > { %v1300_v35 = vmax.f32 %v2622_v50, 1e-24  ;;  %v2096_v41 = vpop.eup %2095 }
 0x1c0   : > { %v2624_v51 = vpop.xlane.xlu0 %788 }
 0x1c1   : > { %2109 = vrsqrt.f32 %v1300_v35  ;;  %v1301_v48 = vmax.f32 %v2624_v51, 1e-24 }
 0x1c2   : > { %v2626_v52 = vpop.xlane.xlu1 %790  ;;  %v2098_v45 = vpop.eup %2097  ;;  %2111 = vrsqrt.f32 %v1299_v39 }
 0x1c3   : > { %v1302_v44 = vmax.f32 %v2626_v52, 1e-24  ;;  %v2100_v50 = vpop.eup %2099 }
 0x1c4   : > { %v2628_v53 = vpop.xlane.xlu0 %792 }
 0x1c5   : > { %2113 = vrsqrt.f32 %v1302_v44  ;;  %v1303_v51 = vmax.f32 %v2628_v53, 1e-24 }
 0x1c6   : > { %v2630_v55 = vpop.xlane.xlu1 %794  ;;  %v2102_v58 = vpop.eup %2101  ;;  %2115 = vrsqrt.f32 %v1301_v48 }
 0x1c7   : > { %v1304_v52 = vmax.f32 %v2630_v55, 1e-24  ;;  %v2104_v2 = vpop.eup %2103 }
 0x1c8   : > { %v2632_v57 = vpop.xlane.xlu0 %796 }
 0x1c9   : > { %2117 = vrsqrt.f32 %v1304_v52  ;;  %v1305_v53 = vmax.f32 %v2632_v57, 1e-24 }
 0x1ca   : > { %v2636_v59 = vpop.xlane.xlu1 %798  ;;  %2119 = vrsqrt.f32 %v1303_v51 }
 0x1cb   : > { %v1306_v55 = vmax.f32 %v2636_v59, 1e-24 }
 0x1cc   : > { %v2638_v61 = vpop.xlane.xlu0 %800 }
 0x1cd   : > { %2121 = vrsqrt.f32 %v1306_v55  ;;  %v1307_v57 = vmax.f32 %v2638_v61, 1e-24 }
 0x1ce   : > { %v2640_v63 = vpop.xlane.xlu1 %802  ;;  %2123 = vrsqrt.f32 %v1305_v53 }
 0x1cf   : > { %v1308_v59 = vmax.f32 %v2640_v63, 1e-24 }
 0x1d0   : > { %v2642_v1 = vpop.xlane.xlu0 %804 }
 0x1d1   : > { %2125 = vrsqrt.f32 %v1308_v59  ;;  %v1309_v61 = vmax.f32 %v2642_v1, 1e-24 }
 0x1d2   : > { %v2644_v3 = vpop.xlane.xlu1 %806  ;;  %2127 = vrsqrt.f32 %v1307_v57 }
 0x1d3   : > { %v1310_v63 = vmax.f32 %v2644_v3, 1e-24 }
 0x1d4   : > { %v2646_v5 = vpop.xlane.xlu0 %808 }
 0x1d5   : > { %2129 = vrsqrt.f32 %v1310_v63  ;;  %v1311_v1 = vmax.f32 %v2646_v5, 1e-24 }
 0x1d6   : > { %v2648_v8 = vpop.xlane.xlu1 %810  ;;  %v1946_v9 = vpop.f32.mrf.mxu1  ;;  %2131 = vrsqrt.f32 %v1309_v61 }
 0x1d7   : > { %v1414_v11 = vmul.f32 %v2082_v7, %v1946_v9  ;;  %v2106_v9 = vpop.eup %2105  ;;  %v1312_v3 = vmax.f32 %v2648_v8, 1e-24 }
 0x1d8   : > { %v966_v13 = vpop.f32.mrf.mxu1  ;;  %v2657_v16 = vpop.xlane.xlu0 %812 }
 0x1d9   : > { %1479 = vst.msk [vmem:[%s2653_s15 + $0x8] sm:$0xff] %vm1477_vm0, %v1414_v11  ;;  %v1413_v15 = vmul.f32 %v2084_v12, %v966_v13  ;;  %v2108_v12 = vpop.eup %2107  ;;  %2133 = vrsqrt.f32 %v1312_v3  ;;  %v1313_v5 = vmax.f32 %v2657_v16, 1e-24 }
 0x1da   : > { %v2659_v18 = vpop.xlane.xlu1 %814  ;;  %v1949_v19 = vpop.f32.mrf.mxu1  ;;  %2135 = vrsqrt.f32 %v1311_v1 }
 0x1db   : > { %1478 = vst.msk [vmem:[%s2653_s15] sm:$0xff] %vm1477_vm0, %v1413_v15  ;;  %v1416_v21 = vmul.f32 %v2086_v17, %v1949_v19  ;;  %v2110_v17 = vpop.eup %2109  ;;  %v1314_v8 = vmax.f32 %v2659_v18, 1e-24 }
 0x1dc   : > { %v976_v23 = vpop.f32.mrf.mxu1  ;;  %v2672_v33 = vpop.xlane.xlu0 %816 }
 0x1dd   : > { %1481 = vst.msk [vmem:[%s2653_s15 + $0x18] sm:$0xff] %vm1477_vm0, %v1416_v21  ;;  %v1415_v25 = vmul.f32 %v2088_v22, %v976_v23  ;;  %v2112_v22 = vpop.eup %2111  ;;  %2137 = vrsqrt.f32 %v1314_v8  ;;  %v1315_v16 = vmax.f32 %v2672_v33, 1e-24 }
 0x1de   : > { %v2667_v27 = vpop.xlane.xlu1 %818  ;;  %v1952_v28 = vpop.f32.mrf.mxu1  ;;  %2139 = vrsqrt.f32 %v1313_v5 }
 0x1df   : > { %1480 = vst.msk [vmem:[%s2653_s15 + $0x10] sm:$0xff] %vm1477_vm0, %v1415_v25  ;;  %v1418_v30 = vmul.f32 %v2090_v26, %v1952_v28  ;;  %v2114_v25 = vpop.eup %2113  ;;  %v1316_v18 = vmax.f32 %v2667_v27, 1e-24 }
 0x1e0   : > { %v986_v34 = vpop.f32.mrf.mxu1  ;;  %v2685_v46 = vpop.xlane.xlu0 %820 }
 0x1e1   : > { %1483 = vst.msk [vmem:[%s2653_s15 + $0x28] sm:$0xff] %vm1477_vm0, %v1418_v30  ;;  %v1417_v36 = vmul.f32 %v2092_v31, %v986_v34  ;;  %v2116_v30 = vpop.eup %2115  ;;  %2141 = vrsqrt.f32 %v1316_v18  ;;  %v1317_v33 = vmax.f32 %v2685_v46, 1e-24 }
 0x1e2   : > { %v1955_v38 = vpop.f32.mrf.mxu1  ;;  %v2680_v42 = vpop.xlane.xlu1 %822  ;;  %2143 = vrsqrt.f32 %v1315_v16 }
 0x1e3   : > { %1482 = vst.msk [vmem:[%s2653_s15 + $0x20] sm:$0xff] %vm1477_vm0, %v1417_v36  ;;  %v1420_v40 = vmul.f32 %v2094_v37, %v1955_v38  ;;  %v2118_v36 = vpop.eup %2117  ;;  %v1318_v27 = vmax.f32 %v2680_v42, 1e-24 }
 0x1e4   : > { %v996_v43 = vpop.f32.mrf.mxu1  ;;  %v2698_v4 = vpop.xlane.xlu0 %824 }
 0x1e5   : > { %1485 = vst.msk [vmem:[%s2653_s15 + $0x38] sm:$0xff] %vm1477_vm0, %v1420_v40  ;;  %v1419_v32 = vmul.f32 %v2096_v41, %v996_v43  ;;  %v2120_v39 = vpop.eup %2119  ;;  %2145 = vrsqrt.f32 %v1318_v27  ;;  %v1319_v46 = vmax.f32 %v2698_v4, 1e-24 }
 0x1e6   : > { %v1958_v47 = vpop.f32.mrf.mxu1  ;;  %v2693_v60 = vpop.xlane.xlu1 %826  ;;  %2147 = vrsqrt.f32 %v1317_v33 }
 0x1e7   : > { %1484 = vst.msk [vmem:[%s2653_s15 + $0x30] sm:$0xff] %vm1477_vm0, %v1419_v32  ;;  %v1422_v49 = vmul.f32 %v2098_v45, %v1958_v47  ;;  %v2122_v44 = vpop.eup %2121  ;;  %v1320_v42 = vmax.f32 %v2693_v60, 1e-24 }
 0x1e8   : > { %v1006_v54 = vpop.f32.mrf.mxu1  ;;  %v2711_v19 = vpop.xlane.xlu0 %828 }
 0x1e9   : > { %1487 = vst.msk [vmem:[%s2653_s15 + $0x48] sm:$0xff] %vm1477_vm0, %v1422_v49  ;;  %v1421_v56 = vmul.f32 %v2100_v50, %v1006_v54  ;;  %v2124_v48 = vpop.eup %2123  ;;  %2149 = vrsqrt.f32 %v1320_v42  ;;  %v1321_v4 = vmax.f32 %v2711_v19, 1e-24 }
 0x1ea   : > { %v1961_v62 = vpop.f32.mrf.mxu1  ;;  %v2706_v13 = vpop.xlane.xlu1 %830  ;;  %2151 = vrsqrt.f32 %v1319_v46 }
 0x1eb   : > { %1486 = vst.msk [vmem:[%s2653_s15 + $0x40] sm:$0xff] %vm1477_vm0, %v1421_v56  ;;  %v1424_v0 = vmul.f32 %v2102_v58, %v1961_v62  ;;  %v2126_v54 = vpop.eup %2125  ;;  %v1322_v60 = vmax.f32 %v2706_v13, 1e-24 }
 0x1ec   : > { %v1016_v6 = vpop.f32.mrf.mxu1  ;;  %v2724_v31 = vpop.xlane.xlu0 %832 }
 0x1ed   : > { %1489 = vst.msk [vmem:[%s2653_s15 + $0x58] sm:$0xff] %vm1477_vm0, %v1424_v0  ;;  %v1423_v7 = vmul.f32 %v2104_v2, %v1016_v6  ;;  %v2128_v62 = vpop.eup %2127  ;;  %2153 = vrsqrt.f32 %v1322_v60  ;;  %v1323_v19 = vmax.f32 %v2724_v31, 1e-24 }
 0x1ee   : > { %v1964_v10 = vpop.f32.mrf.mxu1  ;;  %v2719_v26 = vpop.xlane.xlu1 %834  ;;  %2155 = vrsqrt.f32 %v1321_v4 }
 0x1ef   : > { %1488 = vst.msk [vmem:[%s2653_s15 + $0x50] sm:$0xff] %vm1477_vm0, %v1423_v7  ;;  %v1426_v11 = vmul.f32 %v2106_v9, %v1964_v10  ;;  %v2130_v6 = vpop.eup %2129  ;;  %v1324_v13 = vmax.f32 %v2719_v26, 1e-24 }
 0x1f0   : > { %v1026_v14 = vpop.f32.mrf.mxu1  ;;  %v2737_v32 = vpop.xlane.xlu0 %836 }
 0x1f1   : > { %1491 = vst.msk [vmem:[%s2653_s15 + $0x68] sm:$0xff] %vm1477_vm0, %v1426_v11  ;;  %v1425_v15 = vmul.f32 %v2108_v12, %v1026_v14  ;;  %v2132_v9 = vpop.eup %2131  ;;  %2157 = vrsqrt.f32 %v1324_v13  ;;  %v1325_v31 = vmax.f32 %v2737_v32, 1e-24 }
 0x1f2   : > { %v1967_v20 = vpop.f32.mrf.mxu1  ;;  %v2732_v40 = vpop.xlane.xlu1 %838  ;;  %2159 = vrsqrt.f32 %v1323_v19 }
 0x1f3   : > { %1490 = vst.msk [vmem:[%s2653_s15 + $0x60] sm:$0xff] %vm1477_vm0, %v1425_v15  ;;  %v1428_v21 = vmul.f32 %v2110_v17, %v1967_v20  ;;  %v2134_v12 = vpop.eup %2133  ;;  %v1326_v26 = vmax.f32 %v2732_v40, 1e-24 }
 0x1f4   : > { %v1036_v23 = vpop.f32.mrf.mxu1  ;;  %v2750_v51 = vpop.xlane.xlu0 %840 }
 0x1f5   : > { %1493 = vst.msk [vmem:[%s2653_s15 + $0x78] sm:$0xff] %vm1477_vm0, %v1428_v21  ;;  %v1427_v24 = vmul.f32 %v2112_v22, %v1036_v23  ;;  %v2136_v17 = vpop.eup %2135  ;;  %2161 = vrsqrt.f32 %v1326_v26 }
 0x1f6   : > { %v1970_v28 = vpop.f32.mrf.mxu1  ;;  %v2745_v52 = vpop.xlane.xlu1 %842  ;;  %2163 = vrsqrt.f32 %v1325_v31 }
 0x1f7   : > { %1492 = vst.msk [vmem:[%s2653_s15 + $0x70] sm:$0xff] %vm1477_vm0, %v1427_v24  ;;  %v1430_v29 = vmul.f32 %v2114_v25, %v1970_v28  ;;  %v2138_v21 = vpop.eup %2137  ;;  %v1328_v40 = vmax.f32 %v2745_v52, 1e-24 }
 0x1f8   : > { %v1046_v34 = vpop.f32.mrf.mxu1  ;;  %v2763_v14 = vpop.xlane.xlu0 %844 }
 0x1f9   : > { %1495 = vst.msk [vmem:[%s2653_s15 + $0x88] sm:$0xff] %vm1477_vm0, %v1430_v29  ;;  %v1429_v35 = vmul.f32 %v2116_v30, %v1046_v34  ;;  %v2140_v24 = vpop.eup %2139  ;;  %2165 = vrsqrt.f32 %v1328_v40 }
 0x1fa   : > { %v1973_v37 = vpop.f32.mrf.mxu1  ;;  %v2758_v10 = vpop.xlane.xlu1 %846 }
 0x1fb   : > { %1494 = vst.msk [vmem:[%s2653_s15 + $0x80] sm:$0xff] %vm1477_vm0, %v1429_v35  ;;  %v1432_v38 = vmul.f32 %v2118_v36, %v1973_v37  ;;  %v2142_v29 = vpop.eup %2141 }
 0x1fc   : > { %v1056_v41 = vpop.f32.mrf.mxu1  ;;  %v2776_v25 = vpop.xlane.xlu0 %848 }
 0x1fd   : > { %1497 = vst.msk [vmem:[%s2653_s15 + $0x98] sm:$0xff] %vm1477_vm0, %v1432_v38  ;;  %v1431_v43 = vmul.f32 %v2120_v39, %v1056_v41  ;;  %v2144_v3 = vpop.eup %2143 }
 0x1fe   : > { %v1976_v45 = vpop.f32.mrf.mxu1  ;;  %v2771_v22 = vpop.xlane.xlu1 %850 }
 0x1ff   : > { %1496 = vst.msk [vmem:[%s2653_s15 + $0x90] sm:$0xff] %vm1477_vm0, %v1431_v43  ;;  %v1434_v47 = vmul.f32 %v2122_v44, %v1976_v45  ;;  %v2146_v1 = vpop.eup %2145 }
 0x200   : > { %v1066_v49 = vpop.f32.mrf.mxu1  ;;  %v2789_v38 = vpop.xlane.xlu0 %852 }
 0x201   : > { %1499 = vst.msk [vmem:[%s2653_s15 + $0xa8] sm:$0xff] %vm1477_vm0, %v1434_v47  ;;  %v1433_v50 = vmul.f32 %v2124_v48, %v1066_v49  ;;  %v2148_v8 = vpop.eup %2147  ;;  %v1327_v48 = vmax.f32 %v2750_v51, 1e-24 }
 0x202   : > { %v1979_v56 = vpop.f32.mrf.mxu1  ;;  %v2784_v35 = vpop.xlane.xlu1 %854 }
 0x203   : > { %1498 = vst.msk [vmem:[%s2653_s15 + $0xa0] sm:$0xff] %vm1477_vm0, %v1433_v50  ;;  %v1436_v58 = vmul.f32 %v2126_v54, %v1979_v56  ;;  %v2150_v45 = vpop.eup %2149  ;;  %v1330_v54 = vmax.f32 %v2758_v10, 1e-24  ;;  %2167 = vrsqrt.f32 %v1327_v48 }
 0x204   : > { %v1076_v0 = vpop.f32.mrf.mxu1  ;;  %v2152_v49 = vpop.eup %2151 }
 0x205   : > { %1501 = vst.msk [vmem:[%s2653_s15 + $0xb8] sm:$0xff] %vm1477_vm0, %v1436_v58  ;;  %v1435_v2 = vmul.f32 %v2128_v62, %v1076_v0  ;;  %v857_v18 = vpop.xlane.xlu0 %856  ;;  %v2154_v56 = vpop.eup %2153  ;;  %v1329_v58 = vmax.f32 %v2763_v14, 1e-24  ;;  %2169 = vrsqrt.f32 %v1330_v54 }
 0x206   : > { %v1982_v55 = vpop.f32.mrf.mxu1  ;;  %v859_v5 = vpop.xlane.xlu1 %858 }
 0x207   : > { %1500 = vst.msk [vmem:[%s2653_s15 + $0xb0] sm:$0xff] %vm1477_vm0, %v1435_v2  ;;  %v1438_v7 = vmul.f32 %v2130_v6, %v1982_v55  ;;  %v2156_v51 = vpop.eup %2155  ;;  %v1332_v2 = vmax.f32 %v2771_v22, 1e-24  ;;  %2171 = vrsqrt.f32 %v1329_v58 }
 0x208   : > { %v1086_v53 = vpop.f32.mrf.mxu1  ;;  %v2158_v55 = vpop.eup %2157 }
 0x209   : > { %1503 = vst.msk [vmem:[%s2653_s15 + $0xc8] sm:$0xff] %vm1477_vm0, %v1438_v7  ;;  %v1437_v11 = vmul.f32 %v2132_v9, %v1086_v53  ;;  %v861_v33 = vpop.xlane.xlu0 %860  ;;  %v1331_v9 = vmax.f32 %v2776_v25, 1e-24  ;;  %v2160_v53 = vpop.eup %2159  ;;  %2173 = vrsqrt.f32 %v1332_v2 }
 0x20a   : > { %v1985_v59 = vpop.f32.mrf.mxu1  ;;  %v863_v0 = vpop.xlane.xlu1 %862 }
 0x20b   : > { %1502 = vst.msk [vmem:[%s2653_s15 + $0xc0] sm:$0xff] %vm1477_vm0, %v1437_v11  ;;  %v1440_v15 = vmul.f32 %v2134_v12, %v1985_v59  ;;  %v1334_v11 = vmax.f32 %v2784_v35, 1e-24  ;;  %v2162_v14 = vpop.eup %2161  ;;  %2175 = vrsqrt.f32 %v1331_v9 }
 0x20c   : > { %v1096_v20 = vpop.f32.mrf.mxu1 }
 0x20d   : > { %1505 = vst.msk [vmem:[%s2653_s15 + $0xd8] sm:$0xff] %vm1477_vm0, %v1440_v15  ;;  %v1439_v57 = vmul.f32 %v2136_v17, %v1096_v20  ;;  %v1333_v15 = vmax.f32 %v2789_v38, 1e-24  ;;  %v2164_v20 = vpop.eup %2163  ;;  %v865_v60 = vpop.xlane.xlu0 %864  ;;  %2177 = vrsqrt.f32 %v1334_v11 }
 0x20e   : > { %v1988_v23 = vpop.f32.mrf.mxu1  ;;  %v867_v59 = vpop.xlane.xlu1 %866 }
 0x20f   : > { %1504 = vst.msk [vmem:[%s2653_s15 + $0xd0] sm:$0xff] %vm1477_vm0, %v1439_v57  ;;  %v1442_v63 = vmul.f32 %v2138_v21, %v1988_v23  ;;  %v1336_v21 = vmax.f32 %v859_v5, 1e-24  ;;  %v2166_v23 = vpop.eup %2165  ;;  %2179 = vrsqrt.f32 %v1333_v15 }
 0x210   : > { %v1106_v28 = vpop.f32.mrf.mxu1  ;;  %v2168_v25 = vpop.eup %2167 }
 0x211   : > { %1507 = vst.msk [vmem:[%s2653_s15 + $0xe8] sm:$0xff] %vm1477_vm0, %v1442_v63  ;;  %v1441_v61 = vmul.f32 %v2140_v24, %v1106_v28  ;;  %v1335_v63 = vmax.f32 %v857_v18, 1e-24  ;;  %2181 = vrsqrt.f32 %v1336_v21  ;;  %v869_v19 = vpop.xlane.xlu0 %868 }
 0x212   : > { %v1991_v30 = vpop.f32.mrf.mxu1  ;;  %v871_v28 = vpop.xlane.xlu1 %870 }
 0x213   : > { %1506 = vst.msk [vmem:[%s2653_s15 + $0xe0] sm:$0xff] %vm1477_vm0, %v1441_v61  ;;  %v1444_v34 = vmul.f32 %v2142_v29, %v1991_v30  ;;  %v1338_v61 = vmax.f32 %v863_v0, 1e-24  ;;  %v2170_v30 = vpop.eup %2169  ;;  %2183 = vrsqrt.f32 %v1335_v63 }
 0x214   : > { %v1116_v36 = vpop.f32.mrf.mxu1 }
 0x215   : > { %1509 = vst.msk [vmem:[%s2653_s15 + $0xf8] sm:$0xff] %vm1477_vm0, %v1444_v34  ;;  %v1443_v37 = vmul.f32 %v2144_v3, %v1116_v36  ;;  %v1337_v3 = vmax.f32 %v861_v33, 1e-24  ;;  %v2172_v36 = vpop.eup %2171  ;;  %2185 = vrsqrt.f32 %v1338_v61  ;;  %v873_v40 = vpop.xlane.xlu0 %872 }
 0x216   : > { %v1994_v39 = vpop.f32.mrf.mxu1  ;;  %v2174_v38 = vpop.eup %2173 }
 0x217   : > { %1508 = vst.msk [vmem:[%s2653_s15 + $0xf0] sm:$0xff] %vm1477_vm0, %v1443_v37  ;;  %v1446_v41 = vmul.f32 %v2146_v1, %v1994_v39  ;;  %v1340_v37 = vmax.f32 %v867_v59, 1e-24  ;;  %v875_v39 = vpop.xlane.xlu1 %874  ;;  %2187 = vrsqrt.f32 %v1337_v3 }
 0x218   : > { %v1126_v43 = vpop.f32.mrf.mxu1 }
 0x219   : > { %1511 = vst.msk [vmem:[%s2653_s15 + $0x108] sm:$0xff] %vm1477_vm0, %v1446_v41  ;;  %v1445_v44 = vmul.f32 %v2148_v8, %v1126_v43  ;;  %v1339_v41 = vmax.f32 %v865_v60, 1e-24  ;;  %v2176_v43 = vpop.eup %2175  ;;  %2189 = vrsqrt.f32 %v1340_v37  ;;  %v877_v58 = vpop.xlane.xlu0 %876 }
 0x21a   : > { %v1997_v47 = vpop.f32.mrf.mxu1 }
 0x21b   : > { %1510 = vst.msk [vmem:[%s2653_s15 + $0x100] sm:$0xff] %vm1477_vm0, %v1445_v44  ;;  %v1448_v32 = vmul.f32 %v2150_v45, %v1997_v47  ;;  %v1342_v45 = vmax.f32 %v871_v28, 1e-24  ;;  %v2178_v47 = vpop.eup %2177  ;;  %2191 = vrsqrt.f32 %v1339_v41 }
 0x21c   : > { %v1136_v50 = vpop.f32.mrf.mxu1  ;;  %v2180_v18 = vpop.eup %2179 }
 0x21d   : > { %1513 = vst.msk [vmem:[%s2653_s15 + $0x118] sm:$0xff] %vm1477_vm0, %v1448_v32  ;;  %v1447_v52 = vmul.f32 %v2152_v49, %v1136_v50  ;;  %v1341_v32 = vmax.f32 %v869_v19, 1e-24  ;;  %v879_v50 = vpop.xlane.xlu1 %878  ;;  %2193 = vrsqrt.f32 %v1342_v45  ;;  %v881_v11 = vpop.xlane.xlu0 %880 }
 0x21e   : > { %v2000_v16 = vpop.f32.mrf.mxu1 }
 0x21f   : > { %1512 = vst.msk [vmem:[%s2653_s15 + $0x110] sm:$0xff] %vm1477_vm0, %v1447_v52  ;;  %v1450_v62 = vmul.f32 %v2154_v56, %v2000_v16  ;;  %v1344_v52 = vmax.f32 %v875_v39, 1e-24  ;;  %v2182_v16 = vpop.eup %2181  ;;  %2195 = vrsqrt.f32 %v1341_v32 }
 0x220   : > { %v1146_v27 = vpop.f32.mrf.mxu1 }
 0x221   : > { %1515 = vst.msk [vmem:[%s2653_s15 + $0x128] sm:$0xff] %vm1477_vm0, %v1450_v62  ;;  %v1449_v6 = vmul.f32 %v2156_v51, %v1146_v27  ;;  %v1343_v51 = vmax.f32 %v873_v40, 1e-24  ;;  %v2184_v27 = vpop.eup %2183  ;;  %2197 = vrsqrt.f32 %v1344_v52 }
 0x222   : > { %v2003_v7 = vpop.f32.mrf.mxu1  ;;  %v2186_v33 = vpop.eup %2185 }
 0x223   : > { %1514 = vst.msk [vmem:[%s2653_s15 + $0x120] sm:$0xff] %vm1477_vm0, %v1449_v6  ;;  %v1452_v10 = vmul.f32 %v2158_v55, %v2003_v7  ;;  %v1346_v6 = vmax.f32 %v879_v50, 1e-24  ;;  %v883_v7 = vpop.xlane.xlu1 %882  ;;  %2199 = vrsqrt.f32 %v1343_v51 }
 0x224   : > { %v1156_v42 = vpop.f32.mrf.mxu1 }
 0x225   : > { %1517 = vst.msk [vmem:[%s2653_s15 + $0x138] sm:$0xff] %vm1477_vm0, %v1452_v10  ;;  %v1451_v12 = vmul.f32 %v2160_v53, %v1156_v42  ;;  %v1345_v10 = vmax.f32 %v877_v58, 1e-24  ;;  %v2188_v42 = vpop.eup %2187  ;;  %2201 = vrsqrt.f32 %v1346_v6 }
 0x226   : > { %v2006_v46 = vpop.f32.mrf.mxu1 }
 0x227   : > { %1516 = vst.msk [vmem:[%s2653_s15 + $0x130] sm:$0xff] %vm1477_vm0, %v1451_v12  ;;  %v1454_v17 = vmul.f32 %v2162_v14, %v2006_v46  ;;  %v1348_v14 = vmax.f32 %v883_v7, 1e-24  ;;  %v2190_v46 = vpop.eup %2189  ;;  %2203 = vrsqrt.f32 %v1345_v10 }
 0x228   : > { %v1166_v57 = vpop.f32.mrf.mxu1  ;;  %v2192_v60 = vpop.eup %2191 }
 0x229   : > { %1519 = vst.msk [vmem:[%s2653_s15 + $0x148] sm:$0xff] %vm1477_vm0, %v1454_v17  ;;  %v1453_v22 = vmul.f32 %v2164_v20, %v1166_v57  ;;  %v1347_v17 = vmax.f32 %v881_v11, 1e-24  ;;  %2205 = vrsqrt.f32 %v1348_v14 }
 0x22a   : > { %v2009_v4 = vpop.f32.mrf.mxu1 }
 0x22b   : > { %1518 = vst.msk [vmem:[%s2653_s15 + $0x140] sm:$0xff] %vm1477_vm0, %v1453_v22  ;;  %v1456_v24 = vmul.f32 %v2166_v23, %v2009_v4  ;;  %v2194_v22 = vpop.eup %2193  ;;  %2207 = vrsqrt.f32 %v1347_v17 }
 0x22c   : > { %v1176_v13 = vpop.f32.mrf.mxu1  ;;  %v2196_v63 = vpop.eup %2195 }
 0x22d   : > { %1521 = vst.msk [vmem:[%s2653_s15 + $0x158] sm:$0xff] %vm1477_vm0, %v1456_v24  ;;  %v1455_v29 = vmul.f32 %v2168_v25, %v1176_v13 }
 0x22e   : > { %v2012_v34 = vpop.f32.mrf.mxu1  ;;  %v2198_v28 = vpop.eup %2197 }
 0x22f   : > { %1520 = vst.msk [vmem:[%s2653_s15 + $0x150] sm:$0xff] %vm1477_vm0, %v1455_v29  ;;  %v1458_v35 = vmul.f32 %v2170_v30, %v2012_v34 }
 0x230   : > { %v1186_v26 = vpop.f32.mrf.mxu1  ;;  %v2200_v29 = vpop.eup %2199 }
 0x231   : > { %1523 = vst.msk [vmem:[%s2653_s15 + $0x168] sm:$0xff] %vm1477_vm0, %v1458_v35  ;;  %v1457_v1 = vmul.f32 %v2172_v36, %v1186_v26 }
 0x232   : > { %v2015_v31 = vpop.f32.mrf.mxu1  ;;  %v2202_v34 = vpop.eup %2201 }
 0x233   : > { %1522 = vst.msk [vmem:[%s2653_s15 + $0x160] sm:$0xff] %vm1477_vm0, %v1457_v1  ;;  %v1460_v8 = vmul.f32 %v2174_v38, %v2015_v31 }
 0x234   : > { %v1196_v44 = vpop.f32.mrf.mxu1  ;;  %v2204_v36 = vpop.eup %2203 }
 0x235   : > { %1525 = vst.msk [vmem:[%s2653_s15 + $0x178] sm:$0xff] %vm1477_vm0, %v1460_v8  ;;  %v1459_v5 = vmul.f32 %v2176_v43, %v1196_v44 }
 0x236   : > { %v2018_v48 = vpop.f32.mrf.mxu1  ;;  %v2206_v1 = vpop.eup %2205 }
 0x237   : > { %1524 = vst.msk [vmem:[%s2653_s15 + $0x170] sm:$0xff] %vm1477_vm0, %v1459_v5  ;;  %v1462_v49 = vmul.f32 %v2178_v47, %v2018_v48 }
 0x238   : > { %v1206_v54 = vpop.f32.mrf.mxu1  ;;  %v2208_v31 = vpop.eup %2207 }
 0x239   : > { %1527 = vst.msk [vmem:[%s2653_s15 + $0x188] sm:$0xff] %vm1477_vm0, %v1462_v49  ;;  %v1461_v56 = vmul.f32 %v2180_v18, %v1206_v54 }
 0x23a   : > { %v2021_v62 = vpop.f32.mrf.mxu1 }
 0x23b   : > { %1526 = vst.msk [vmem:[%s2653_s15 + $0x180] sm:$0xff] %vm1477_vm0, %v1461_v56  ;;  %v1464_v0 = vmul.f32 %v2182_v16, %v2021_v62 }
 0x23c   : > { %v1216_v2 = vpop.f32.mrf.mxu1 }
 0x23d   : > { %1529 = vst.msk [vmem:[%s2653_s15 + $0x198] sm:$0xff] %vm1477_vm0, %v1464_v0  ;;  %v1463_v55 = vmul.f32 %v2184_v27, %v1216_v2 }
 0x23e   : > { %v2024_v9 = vpop.f32.mrf.mxu1 }
 0x23f   : > { %1528 = vst.msk [vmem:[%s2653_s15 + $0x190] sm:$0xff] %vm1477_vm0, %v1463_v55  ;;  %v1466_v53 = vmul.f32 %v2186_v33, %v2024_v9 }
 0x240   : > { %v1226_v12 = vpop.f32.mrf.mxu1 }
 0x241   : > { %1531 = vst.msk [vmem:[%s2653_s15 + $0x1a8] sm:$0xff] %vm1477_vm0, %v1466_v53  ;;  %v1465_v59 = vmul.f32 %v2188_v42, %v1226_v12 }
 0x242   : > { %v2027_v15 = vpop.f32.mrf.mxu1 }
 0x243   : > { %1530 = vst.msk [vmem:[%s2653_s15 + $0x1a0] sm:$0xff] %vm1477_vm0, %v1465_v59  ;;  %v1468_v20 = vmul.f32 %v2190_v46, %v2027_v15 }
 0x244   : > { %v1236_v57 = vpop.f32.mrf.mxu1 }
 0x245   : > { %1533 = vst.msk [vmem:[%s2653_s15 + $0x1b8] sm:$0xff] %vm1477_vm0, %v1468_v20  ;;  %v1467_v21 = vmul.f32 %v2192_v60, %v1236_v57 }
 0x246   : > { %v2030_v23 = vpop.f32.mrf.mxu1 }
 0x247   : > { %1532 = vst.msk [vmem:[%s2653_s15 + $0x1b0] sm:$0xff] %vm1477_vm0, %v1467_v21  ;;  %v1470_v4 = vmul.f32 %v2194_v22, %v2030_v23 }
 0x248   : > { %v1246_v24 = vpop.f32.mrf.mxu1 }
 0x249   : > { %1535 = vst.msk [vmem:[%s2653_s15 + $0x1c8] sm:$0xff] %vm1477_vm0, %v1470_v4  ;;  %v1469_v25 = vmul.f32 %v2196_v63, %v1246_v24 }
 0x24a   : > { %v2033_v13 = vpop.f32.mrf.mxu1 }
 0x24b   : > { %1534 = vst.msk [vmem:[%s2653_s15 + $0x1c0] sm:$0xff] %vm1477_vm0, %v1469_v25  ;;  %v1472_v61 = vmul.f32 %v2198_v28, %v2033_v13 }
 0x24c   : > { %v1256_v30 = vpop.f32.mrf.mxu1 }
 0x24d   : > { %1537 = vst.msk [vmem:[%s2653_s15 + $0x1d8] sm:$0xff] %vm1477_vm0, %v1472_v61  ;;  %v1471_v19 = vmul.f32 %v2200_v29, %v1256_v30 }
 0x24e   : > { %v2036_v3 = vpop.f32.mrf.mxu1 }
 0x24f   : > { %1536 = vst.msk [vmem:[%s2653_s15 + $0x1d0] sm:$0xff] %vm1477_vm0, %v1471_v19  ;;  %v1474_v35 = vmul.f32 %v2202_v34, %v2036_v3 }
 0x250   : > { %v1266_v26 = vpop.f32.mrf.mxu1 }
 0x251   : > { %1539 = vst.msk [vmem:[%s2653_s15 + $0x1e8] sm:$0xff] %vm1477_vm0, %v1474_v35  ;;  %v1473_v37 = vmul.f32 %v2204_v36, %v1266_v26 }
 0x252   : > { %v2039_v38 = vpop.f32.mrf.mxu1 }
 0x253   : > { %1538 = vst.msk [vmem:[%s2653_s15 + $0x1e0] sm:$0xff] %vm1477_vm0, %v1473_v37  ;;  %v1476_v39 = vmul.f32 %v2206_v1, %v2039_v38 }
 0x254   : > { %v1276_v41 = vpop.f32.mrf.mxu1 }
 0x255   : > { %1541 = vst.msk [vmem:[%s2653_s15 + $0x1f8] sm:$0xff] %vm1477_vm0, %v1476_v39  ;;  %v1475_v8 = vmul.f32 %v2208_v31, %v1276_v41 }
 0x257   : > { %1540 = vst.msk [vmem:[%s2653_s15 + $0x1f0] sm:$0xff] %vm1477_vm0, %v1475_v8 }
 0x258 PF: > { %p14_p9 = scmp.ge.s32.totalorder %s2321_s20, 4   ;;  %s2889_s15 = smov %s2263_s16 }
 0x259   : > { %s2890_s16 = smov %s2267_s17  ;;  %s2891_s17 = smov %s2331_s23 }
 0x25a   : > { %s2892_s18 = smov %s2321_s20  ;;  %16 = sbr.rel (!%p14_p9) target bundleno = 3 (0x3), region = 76 }
 0x25f   :  { %1564 = vsyncpa [#allocation3], 1 }
 0x260   :  { %1566 = vsyncpa [#allocation3 + $0x1], 1 }

</bundles_post_ra>
